<compile_context>
chip_gen: v5e
topology: v5e:2x2
jax: 0.10.0
libtpu: 0.0.40
codegen_flags: <defaults>
</compile_context>

<pallas_src>
import functools

import jax
import jax.numpy as jnp
from jax import lax
from jax.experimental import pallas as pl
from jax.experimental.pallas import tpu as pltpu


# -----------------------------------------------------------------------------
# Fused per-batch kernel: conv1+ReLU -> conv2+ReLU -> flatten(C,H,W) -> fc1+ReLU
#                         -> fc2+ReLU -> fc3      (all contractions on the MXU)
# -----------------------------------------------------------------------------
def _kernel(xp_ref, w1_ref, b1_ref, w2_ref, b2_ref,
            fw1_ref, fb1_ref, fw2_ref, fb2_ref, fw3_ref, fb3_ref,
            out_ref, *, H, W, C1, C2, F1):
    f32 = jnp.float32
    HW = H * W

    # ---- conv1 + ReLU: one dot (C1, 9*Cin) @ (9*Cin, HW), channel-major out ----
    xp = xp_ref[...]                                           # (9*Cin, HW)
    a1 = jnp.dot(w1_ref[...], xp, preferred_element_type=f32)  # (C1, HW)
    a1 = jnp.maximum(a1 + b1_ref[...], 0.0)                    # lane-dense

    # ---- conv2 + ReLU: masked lane-shift im2col, one K = 9*C1 dot -------------
    PAD = W + 1                                    # covers max |shift| = W + 1
    zpad = jnp.zeros((C1, PAD), f32)
    a1p = jnp.concatenate([zpad, a1, zpad], axis=1)            # (C1, HW + 2*PAD)

    w_idx = lax.broadcasted_iota(jnp.int32, (C1, HW), 1) % W
    not_left = w_idx != 0          # source col w-1 invalid at w == 0
    not_right = w_idx != (W - 1)   # source col w+1 invalid at w == W-1

    taps = []
    for dh in range(3):
        for dw in range(3):
            s = (dh - 1) * W + (dw - 1)
            t = a1p[:, PAD + s: PAD + s + HW]                  # (C1, HW)
            if dw == 0:
                t = jnp.where(not_left, t, 0.0)
            elif dw == 2:
                t = jnp.where(not_right, t, 0.0)
            # row-invalid sources land in the zero extension (or are col-masked)
            taps.append(t)
    patch2 = jnp.concatenate(taps, axis=0)                     # (9*C1, HW)

    a2 = jnp.dot(w2_ref[...], patch2, preferred_element_type=f32)  # (C2, HW)
    a2 = jnp.maximum(a2 + b2_ref[...], 0.0)        # rows = channel, cols = h*W+w
    # a2 flattened row-major is exactly the torch flatten order c*H*W + h*W + w.

    # ---- flatten + fc1 + ReLU as ONE MXU dot ----------------------------------
    # fw1_ref is fc1_w pre-permuted to (HW, C2*F1): fw1[hw, c*F1+f] = fc1_w[f, c*HW+hw].
    # T[c, c'*F1+f] = sum_hw a2[c, hw] * fc1_w[f, c'*HW+hw]; keep the c == c' blocks.
    T = jnp.dot(a2, fw1_ref[...], preferred_element_type=f32)  # (C2, C2*F1)
    h1 = fb1_ref[...]                                          # (1, F1)
    for c in range(C2):
        h1 = h1 + T[c:c + 1, c * F1:(c + 1) * F1]
    h1 = jnp.maximum(h1, 0.0)

    # ---- fc2 + ReLU -> fc3 ----------------------------------------------------
    h2 = jnp.maximum(
        jnp.dot(h1, fw2_ref[...], preferred_element_type=f32) + fb2_ref[...], 0.0)
    out_ref[...] = (jnp.dot(h2, fw3_ref[...], preferred_element_type=f32)
                    + fb3_ref[...])


def fused_forward(xp, p, H, W):
    """xp: (B, 9*Cin, H*W) im2col'd conv1 input; p: prepared params."""
    B, K1, HW = xp.shape
    C1 = p["w1"].shape[0]
    C2 = p["w2"].shape[0]
    K2 = p["w2"].shape[1]
    F1 = p["fb1"].shape[1]
    F2 = p["fb2"].shape[1]
    L = p["fb3"].shape[1]

    kernel = functools.partial(_kernel, H=H, W=W, C1=C1, C2=C2, F1=F1)
    const = lambda b: (0, 0)
    out = pl.pallas_call(
        kernel,
        out_shape=jax.ShapeDtypeStruct((B, 1, L), jnp.float32),
        grid=(B,),
        in_specs=[
            pl.BlockSpec((None, K1, HW), lambda b: (b, 0, 0)),
            pl.BlockSpec((C1, K1), const),
            pl.BlockSpec((C1, 1), const),
            pl.BlockSpec((C2, K2), const),
            pl.BlockSpec((C2, 1), const),
            pl.BlockSpec((HW, C2 * F1), const),
            pl.BlockSpec((1, F1), const),
            pl.BlockSpec((F1, F2), const),
            pl.BlockSpec((1, F2), const),
            pl.BlockSpec((F2, L), const),
            pl.BlockSpec((1, L), const),
        ],
        out_specs=pl.BlockSpec((None, 1, L), lambda b: (b, 0, 0)),
        compiler_params=pltpu.CompilerParams(dimension_semantics=("parallel",)),
    )(xp, p["w1"], p["b1"], p["w2"], p["b2"],
      p["fw1"], p["fb1"], p["fw2"], p["fb2"], p["fw3"], p["fb3"])
    return out.reshape(B, L)


# -----------------------------------------------------------------------------
# One-time parameter preparation (all layout transforms hoisted out of forward)
# -----------------------------------------------------------------------------
def prepare_params(params, H, W):
    C1, Cin = params["conv1_w"].shape[0], params["conv1_w"].shape[1]
    C2 = params["conv2_w"].shape[0]
    F1 = params["fc1_w"].shape[0]
    F2 = params["fc2_w"].shape[0]
    L = params["fc3_w"].shape[0]
    # fc1 column order assumption: torch NCHW flatten => column k = c*H*W + h*W + w.
    assert params["fc1_w"].shape[1] == C2 * H * W, "fc1_w must be (F1, C2*H*W)"

    # conv weights (O, I, kh, kw) -> (O, tap*I + i) with tap = kh*3 + kw.
    w1 = jnp.transpose(params["conv1_w"], (0, 2, 3, 1)).reshape(C1, 9 * Cin)
    w2 = jnp.transpose(params["conv2_w"], (0, 2, 3, 1)).reshape(C2, 9 * C1)
    # fc1 wide weight: fw1[hw, c*F1 + f] = fc1_w[f, c*H*W + hw].
    fw1 = jnp.transpose(params["fc1_w"].reshape(F1, C2, H * W),
                        (2, 1, 0)).reshape(H * W, C2 * F1)
    return {
        "w1": w1, "b1": params["conv1_b"].reshape(C1, 1),
        "w2": w2, "b2": params["conv2_b"].reshape(C2, 1),
        "fw1": fw1, "fb1": params["fc1_b"].reshape(1, F1),
        "fw2": jnp.transpose(params["fc2_w"]), "fb2": params["fc2_b"].reshape(1, F2),
        "fw3": jnp.transpose(params["fc3_w"]), "fb3": params["fc3_b"].reshape(1, L),
    }


# -----------------------------------------------------------------------------
# Forward: tiny XLA-side im2col of the 8 KiB input, then one fused kernel.
# -----------------------------------------------------------------------------
def _conv1_patches(x_nchw):
    B, Cin, H, W = x_nchw.shape
    x = jnp.transpose(x_nchw, (0, 2, 3, 1))                    # NHWC
    xpad = jnp.pad(x, ((0, 0), (1, 1), (1, 1), (0, 0)))
    taps = [xpad[:, dh:dh + H, dw:dw + W, :]
            for dh in range(3) for dw in range(3)]             # each (B,H,W,Cin)
    xp = jnp.stack(taps, axis=3)                               # (B,H,W,9,Cin)
    xp = xp.reshape(B, H * W, 9 * Cin)                         # cols = tap*Cin+ci
    return jnp.transpose(xp, (0, 2, 1))                        # (B, 9*Cin, H*W)


@jax.jit
def observation_to_latent(x_nchw, prepped):
    B, Cin, H, W = x_nchw.shape
    xp = _conv1_patches(x_nchw)
    return fused_forward(xp, prepped, H, W)


# -----------------------------------------------------------------------------
# Pure-JAX reference (mirrors the PyTorch forward exactly)
# -----------------------------------------------------------------------------
def reference(x_nchw, params):
    hp = lax.Precision.HIGHEST
    dn1 = lax.conv_dimension_numbers(x_nchw.shape, params["conv1_w"].shape,
                                     ("NCHW", "OIHW", "NCHW"))
    y = lax.conv_general_dilated(x_nchw, params["conv1_w"], (1, 1),
                                 [(1, 1), (1, 1)], dimension_numbers=dn1,
                                 precision=hp)
    y = jnp.maximum(y + params["conv1_b"][None, :, None, None], 0.0)
    dn2 = lax.conv_dimension_numbers(y.shape, params["conv2_w"].shape,
                                     ("NCHW", "OIHW", "NCHW"))
    y = lax.conv_general_dilated(y, params["conv2_w"], (1, 1),
                                 [(1, 1), (1, 1)], dimension_numbers=dn2,
                                 precision=hp)
    y = jnp.maximum(y + params["conv2_b"][None, :, None, None], 0.0)
    flat = y.reshape(y.shape[0], -1)                           # (C, H, W) flatten
    h = jnp.maximum(jnp.dot(flat, params["fc1_w"].T, precision=hp) + params["fc1_b"], 0.0)
    h = jnp.maximum(jnp.dot(h, params["fc2_w"].T, precision=hp) + params["fc2_b"], 0.0)
    return jnp.dot(h, params["fc3_w"].T, precision=hp) + params["fc3_b"]


if __name__ == "__main__":
    B, Cin, H, W = 2, 4, 16, 16
    latent_dim = 8

    key = jax.random.PRNGKey(0)
    ks = jax.random.split(key, 11)
    f32 = jnp.float32

    params = {
        "conv1_w": jax.random.normal(ks[0], (16, Cin, 3, 3), f32) * (1.0 / (9 * Cin) ** 0.5),
        "conv1_b": jax.random.normal(ks[1], (16,), f32) * 0.05,
        "conv2_w": jax.random.normal(ks[2], (16, 16, 3, 3), f32) * (1.0 / (9 * 16) ** 0.5),
        "conv2_b": jax.random.normal(ks[3], (16,), f32) * 0.05,
        "fc1_w": jax.random.normal(ks[4], (64, 16 * H * W), f32) * (1.0 / (16 * H * W) ** 0.5),
        "fc1_b": jax.random.normal(ks[5], (64,), f32) * 0.05,
        "fc2_w": jax.random.normal(ks[6], (32, 64), f32) * (1.0 / 64 ** 0.5),
        "fc2_b": jax.random.normal(ks[7], (32,), f32) * 0.05,
        "fc3_w": jax.random.normal(ks[8], (latent_dim, 32), f32) * (1.0 / 32 ** 0.5),
        "fc3_b": jax.random.normal(ks[9], (latent_dim,), f32) * 0.05,
    }

    x = jax.random.normal(ks[10], (B, Cin, H, W), f32)          # NCHW, like PyTorch

    prepped = jax.block_until_ready(prepare_params(params, H, W))

    out = jax.block_until_ready(observation_to_latent(x, prepped))
    ref = jax.block_until_ready(reference(x, params))

    max_diff = float(jnp.max(jnp.abs(out - ref)))
    assert out.shape == (B, latent_dim), out.shape
    assert max_diff < 2e-3, f"mismatch vs reference: max abs diff = {max_diff}"

    print("KERNEL_OK")
</pallas_src>

<mosaic_0001>
module attributes {stable_mosaic.version = 11 : i64} {
  func.func @_kernel(%arg0: i32, %arg1: memref<1x36x256xf32, #tpu.memory_space<vmem>>, %arg2: memref<16x36xf32, #tpu.memory_space<vmem>>, %arg3: memref<16x1xf32, #tpu.memory_space<vmem>>, %arg4: memref<16x144xf32, #tpu.memory_space<vmem>>, %arg5: memref<16x1xf32, #tpu.memory_space<vmem>>, %arg6: memref<256x1024xf32, #tpu.memory_space<vmem>>, %arg7: memref<1x64xf32, #tpu.memory_space<vmem>>, %arg8: memref<64x32xf32, #tpu.memory_space<vmem>>, %arg9: memref<1x32xf32, #tpu.memory_space<vmem>>, %arg10: memref<32x8xf32, #tpu.memory_space<vmem>>, %arg11: memref<1x8xf32, #tpu.memory_space<vmem>>, %arg12: memref<1x1x8xf32, #tpu.memory_space<vmem>>) attributes {dimension_semantics = [#tpu.dimension_semantics<parallel>], iteration_bounds = array<i64: 2>, scalar_prefetch = 0 : i64, scratch_operands = 0 : i64, tpu.core_type = #tpu.core_type<tc>, window_params = [{transform_indices = @transform_0, window_bounds = array<i64: 1, 36, 256>}, {pipeline_mode = #tpu.pipeline_mode<synchronous>, transform_indices = @transform_1, window_bounds = array<i64: 16, 36>}, {pipeline_mode = #tpu.pipeline_mode<synchronous>, transform_indices = @transform_2, window_bounds = array<i64: 16, 1>}, {pipeline_mode = #tpu.pipeline_mode<synchronous>, transform_indices = @transform_3, window_bounds = array<i64: 16, 144>}, {pipeline_mode = #tpu.pipeline_mode<synchronous>, transform_indices = @transform_4, window_bounds = array<i64: 16, 1>}, {pipeline_mode = #tpu.pipeline_mode<synchronous>, transform_indices = @transform_5, window_bounds = array<i64: 256, 1024>}, {pipeline_mode = #tpu.pipeline_mode<synchronous>, transform_indices = @transform_6, window_bounds = array<i64: 1, 64>}, {pipeline_mode = #tpu.pipeline_mode<synchronous>, transform_indices = @transform_7, window_bounds = array<i64: 64, 32>}, {pipeline_mode = #tpu.pipeline_mode<synchronous>, transform_indices = @transform_8, window_bounds = array<i64: 1, 32>}, {pipeline_mode = #tpu.pipeline_mode<synchronous>, transform_indices = @transform_9, window_bounds = array<i64: 32, 8>}, {pipeline_mode = #tpu.pipeline_mode<synchronous>, transform_indices = @transform_10, window_bounds = array<i64: 1, 8>}, {transform_indices = @transform_11, window_bounds = array<i64: 1, 1, 8>}]} {
    %c0 = arith.constant 0 : index
    %c0_0 = arith.constant 0 : index
    %c0_1 = arith.constant 0 : index
    %0 = vector.load %arg1[%c0, %c0_0, %c0_1] : memref<1x36x256xf32, #tpu.memory_space<vmem>>, vector<1x36x256xf32>
    %1 = vector.shape_cast %0 : vector<1x36x256xf32> to vector<36x256xf32>
    %c0_2 = arith.constant 0 : index
    %c0_3 = arith.constant 0 : index
    %2 = vector.load %arg2[%c0_2, %c0_3] : memref<16x36xf32, #tpu.memory_space<vmem>>, vector<16x36xf32>
    %cst = arith.constant dense<0.000000e+00> : vector<16x256xf32>
    %3 = tpu.matmul %2, %1, %cst {dimension_numbers = #tpu.dot_dimension_numbers<[1], [0], [0], [1], [0, 0, 1, 1], [], []>} : vector<16x36xf32>, vector<36x256xf32>, vector<16x256xf32> -> vector<16x256xf32>
    %c0_4 = arith.constant 0 : index
    %c0_5 = arith.constant 0 : index
    %4 = vector.load %arg3[%c0_4, %c0_5] : memref<16x1xf32, #tpu.memory_space<vmem>>, vector<16x1xf32>
    %5 = vector.broadcast %4 : vector<16x1xf32> to vector<16x256xf32>
    %6 = arith.addf %3, %5 : vector<16x256xf32>
    %cst_6 = arith.constant 0.000000e+00 : f32
    %7 = vector.broadcast %cst_6 : f32 to vector<16x256xf32>
    %8 = arith.maximumf %6, %7 : vector<16x256xf32>
    %cst_7 = arith.constant 0.000000e+00 : f32
    %9 = vector.broadcast %cst_7 : f32 to vector<16x17xf32>
    %10 = tpu.concatenate %9, %8, %9 in 1 : vector<16x17xf32>, vector<16x256xf32>, vector<16x17xf32> -> vector<16x290xf32>
    %11 = tpu.iota {dimensions = array<i32: 1>} : vector<16x256xi32>
    %c16_i32 = arith.constant 16 : i32
    %c0_i32 = arith.constant 0 : i32
    %12 = arith.cmpi eq, %c16_i32, %c0_i32 : i32
    %c1_i32 = arith.constant 1 : i32
    %13 = arith.select %12, %c1_i32, %c16_i32 : i32
    %14 = vector.broadcast %13 : i32 to vector<16x256xi32>
    %15 = arith.remsi %11, %14 : vector<16x256xi32>
    %c0_i32_8 = arith.constant 0 : i32
    %16 = vector.broadcast %c0_i32_8 : i32 to vector<16x256xi32>
    %17 = arith.cmpi ne, %15, %16 : vector<16x256xi32>
    %c0_i32_9 = arith.constant 0 : i32
    %18 = vector.broadcast %c0_i32_9 : i32 to vector<16x256xi32>
    %19 = arith.cmpi slt, %15, %18 : vector<16x256xi32>
    %c0_i32_10 = arith.constant 0 : i32
    %20 = arith.cmpi slt, %13, %c0_i32_10 : i32
    %21 = vector.broadcast %20 : i1 to vector<16x256xi1>
    %22 = vector.broadcast %21 : vector<16x256xi1> to vector<16x256xi1>
    %23 = arith.xori %19, %22 : vector<16x256xi1>
    %24 = arith.andi %23, %17 : vector<16x256xi1>
    %25 = vector.broadcast %13 : i32 to vector<16x256xi32>
    %26 = arith.addi %15, %25 : vector<16x256xi32>
    %27 = arith.select %24, %26, %15 : vector<16x256xi1>, vector<16x256xi32>
    %c0_i32_11 = arith.constant 0 : i32
    %28 = vector.broadcast %c0_i32_11 : i32 to vector<16x256xi32>
    %29 = arith.cmpi ne, %27, %28 : vector<16x256xi32>
    %c15_i32 = arith.constant 15 : i32
    %30 = vector.broadcast %c15_i32 : i32 to vector<16x256xi32>
    %31 = arith.cmpi ne, %27, %30 : vector<16x256xi32>
    %32 = vector.extract_strided_slice %10 {offsets = [0, 0], sizes = [16, 256], strides = [1, 1]} : vector<16x290xf32> to vector<16x256xf32>
    %cst_12 = arith.constant 0.000000e+00 : f32
    %33 = vector.broadcast %cst_12 : f32 to vector<16x256xf32>
    %34 = arith.select %29, %32, %33 : vector<16x256xi1>, vector<16x256xf32>
    %35 = vector.extract_strided_slice %10 {offsets = [0, 1], sizes = [16, 256], strides = [1, 1]} : vector<16x290xf32> to vector<16x256xf32>
    %36 = vector.extract_strided_slice %10 {offsets = [0, 2], sizes = [16, 256], strides = [1, 1]} : vector<16x290xf32> to vector<16x256xf32>
    %cst_13 = arith.constant 0.000000e+00 : f32
    %37 = vector.broadcast %cst_13 : f32 to vector<16x256xf32>
    %38 = arith.select %31, %36, %37 : vector<16x256xi1>, vector<16x256xf32>
    %39 = vector.extract_strided_slice %10 {offsets = [0, 16], sizes = [16, 256], strides = [1, 1]} : vector<16x290xf32> to vector<16x256xf32>
    %cst_14 = arith.constant 0.000000e+00 : f32
    %40 = vector.broadcast %cst_14 : f32 to vector<16x256xf32>
    %41 = arith.select %29, %39, %40 : vector<16x256xi1>, vector<16x256xf32>
    %42 = vector.extract_strided_slice %10 {offsets = [0, 17], sizes = [16, 256], strides = [1, 1]} : vector<16x290xf32> to vector<16x256xf32>
    %43 = vector.extract_strided_slice %10 {offsets = [0, 18], sizes = [16, 256], strides = [1, 1]} : vector<16x290xf32> to vector<16x256xf32>
    %cst_15 = arith.constant 0.000000e+00 : f32
    %44 = vector.broadcast %cst_15 : f32 to vector<16x256xf32>
    %45 = arith.select %31, %43, %44 : vector<16x256xi1>, vector<16x256xf32>
    %46 = vector.extract_strided_slice %10 {offsets = [0, 32], sizes = [16, 256], strides = [1, 1]} : vector<16x290xf32> to vector<16x256xf32>
    %cst_16 = arith.constant 0.000000e+00 : f32
    %47 = vector.broadcast %cst_16 : f32 to vector<16x256xf32>
    %48 = arith.select %29, %46, %47 : vector<16x256xi1>, vector<16x256xf32>
    %49 = vector.extract_strided_slice %10 {offsets = [0, 33], sizes = [16, 256], strides = [1, 1]} : vector<16x290xf32> to vector<16x256xf32>
    %50 = vector.extract_strided_slice %10 {offsets = [0, 34], sizes = [16, 256], strides = [1, 1]} : vector<16x290xf32> to vector<16x256xf32>
    %cst_17 = arith.constant 0.000000e+00 : f32
    %51 = vector.broadcast %cst_17 : f32 to vector<16x256xf32>
    %52 = arith.select %31, %50, %51 : vector<16x256xi1>, vector<16x256xf32>
    %53 = tpu.concatenate %34, %35, %38, %41, %42, %45, %48, %49, %52 in 0 : vector<16x256xf32>, vector<16x256xf32>, vector<16x256xf32>, vector<16x256xf32>, vector<16x256xf32>, vector<16x256xf32>, vector<16x256xf32>, vector<16x256xf32>, vector<16x256xf32> -> vector<144x256xf32>
    %c0_18 = arith.constant 0 : index
    %c0_19 = arith.constant 0 : index
    %54 = vector.load %arg4[%c0_18, %c0_19] : memref<16x144xf32, #tpu.memory_space<vmem>>, vector<16x144xf32>
    %cst_20 = arith.constant dense<0.000000e+00> : vector<16x256xf32>
    %55 = tpu.matmul %54, %53, %cst_20 {dimension_numbers = #tpu.dot_dimension_numbers<[1], [0], [0], [1], [0, 0, 1, 1], [], []>} : vector<16x144xf32>, vector<144x256xf32>, vector<16x256xf32> -> vector<16x256xf32>
    %c0_21 = arith.constant 0 : index
    %c0_22 = arith.constant 0 : index
    %56 = vector.load %arg5[%c0_21, %c0_22] : memref<16x1xf32, #tpu.memory_space<vmem>>, vector<16x1xf32>
    %57 = vector.broadcast %56 : vector<16x1xf32> to vector<16x256xf32>
    %58 = arith.addf %55, %57 : vector<16x256xf32>
    %cst_23 = arith.constant 0.000000e+00 : f32
    %59 = vector.broadcast %cst_23 : f32 to vector<16x256xf32>
    %60 = arith.maximumf %58, %59 : vector<16x256xf32>
    %c0_24 = arith.constant 0 : index
    %c0_25 = arith.constant 0 : index
    %61 = vector.load %arg6[%c0_24, %c0_25] : memref<256x1024xf32, #tpu.memory_space<vmem>>, vector<256x1024xf32>
    %cst_26 = arith.constant dense<0.000000e+00> : vector<16x1024xf32>
    %62 = tpu.matmul %60, %61, %cst_26 {dimension_numbers = #tpu.dot_dimension_numbers<[1], [0], [0], [1], [0, 0, 1, 1], [], []>} : vector<16x256xf32>, vector<256x1024xf32>, vector<16x1024xf32> -> vector<16x1024xf32>
    %c0_27 = arith.constant 0 : index
    %c0_28 = arith.constant 0 : index
    %63 = vector.load %arg7[%c0_27, %c0_28] : memref<1x64xf32, #tpu.memory_space<vmem>>, vector<1x64xf32>
    %64 = vector.extract_strided_slice %62 {offsets = [0, 0], sizes = [1, 64], strides = [1, 1]} : vector<16x1024xf32> to vector<1x64xf32>
    %65 = arith.addf %63, %64 : vector<1x64xf32>
    %66 = vector.extract_strided_slice %62 {offsets = [1, 64], sizes = [1, 64], strides = [1, 1]} : vector<16x1024xf32> to vector<1x64xf32>
    %67 = arith.addf %65, %66 : vector<1x64xf32>
    %68 = vector.extract_strided_slice %62 {offsets = [2, 128], sizes = [1, 64], strides = [1, 1]} : vector<16x1024xf32> to vector<1x64xf32>
    %69 = arith.addf %67, %68 : vector<1x64xf32>
    %70 = vector.extract_strided_slice %62 {offsets = [3, 192], sizes = [1, 64], strides = [1, 1]} : vector<16x1024xf32> to vector<1x64xf32>
    %71 = arith.addf %69, %70 : vector<1x64xf32>
    %72 = vector.extract_strided_slice %62 {offsets = [4, 256], sizes = [1, 64], strides = [1, 1]} : vector<16x1024xf32> to vector<1x64xf32>
    %73 = arith.addf %71, %72 : vector<1x64xf32>
    %74 = vector.extract_strided_slice %62 {offsets = [5, 320], sizes = [1, 64], strides = [1, 1]} : vector<16x1024xf32> to vector<1x64xf32>
    %75 = arith.addf %73, %74 : vector<1x64xf32>
    %76 = vector.extract_strided_slice %62 {offsets = [6, 384], sizes = [1, 64], strides = [1, 1]} : vector<16x1024xf32> to vector<1x64xf32>
    %77 = arith.addf %75, %76 : vector<1x64xf32>
    %78 = vector.extract_strided_slice %62 {offsets = [7, 448], sizes = [1, 64], strides = [1, 1]} : vector<16x1024xf32> to vector<1x64xf32>
    %79 = arith.addf %77, %78 : vector<1x64xf32>
    %80 = vector.extract_strided_slice %62 {offsets = [8, 512], sizes = [1, 64], strides = [1, 1]} : vector<16x1024xf32> to vector<1x64xf32>
    %81 = arith.addf %79, %80 : vector<1x64xf32>
    %82 = vector.extract_strided_slice %62 {offsets = [9, 576], sizes = [1, 64], strides = [1, 1]} : vector<16x1024xf32> to vector<1x64xf32>
    %83 = arith.addf %81, %82 : vector<1x64xf32>
    %84 = vector.extract_strided_slice %62 {offsets = [10, 640], sizes = [1, 64], strides = [1, 1]} : vector<16x1024xf32> to vector<1x64xf32>
    %85 = arith.addf %83, %84 : vector<1x64xf32>
    %86 = vector.extract_strided_slice %62 {offsets = [11, 704], sizes = [1, 64], strides = [1, 1]} : vector<16x1024xf32> to vector<1x64xf32>
    %87 = arith.addf %85, %86 : vector<1x64xf32>
    %88 = vector.extract_strided_slice %62 {offsets = [12, 768], sizes = [1, 64], strides = [1, 1]} : vector<16x1024xf32> to vector<1x64xf32>
    %89 = arith.addf %87, %88 : vector<1x64xf32>
    %90 = vector.extract_strided_slice %62 {offsets = [13, 832], sizes = [1, 64], strides = [1, 1]} : vector<16x1024xf32> to vector<1x64xf32>
    %91 = arith.addf %89, %90 : vector<1x64xf32>
    %92 = vector.extract_strided_slice %62 {offsets = [14, 896], sizes = [1, 64], strides = [1, 1]} : vector<16x1024xf32> to vector<1x64xf32>
    %93 = arith.addf %91, %92 : vector<1x64xf32>
    %94 = vector.extract_strided_slice %62 {offsets = [15, 960], sizes = [1, 64], strides = [1, 1]} : vector<16x1024xf32> to vector<1x64xf32>
    %95 = arith.addf %93, %94 : vector<1x64xf32>
    %cst_29 = arith.constant 0.000000e+00 : f32
    %96 = vector.broadcast %cst_29 : f32 to vector<1x64xf32>
    %97 = arith.maximumf %95, %96 : vector<1x64xf32>
    %c0_30 = arith.constant 0 : index
    %c0_31 = arith.constant 0 : index
    %98 = vector.load %arg8[%c0_30, %c0_31] : memref<64x32xf32, #tpu.memory_space<vmem>>, vector<64x32xf32>
    %cst_32 = arith.constant dense<0.000000e+00> : vector<1x32xf32>
    %99 = tpu.matmul %97, %98, %cst_32 {dimension_numbers = #tpu.dot_dimension_numbers<[1], [0], [0], [1], [0, 0, 1, 1], [], []>} : vector<1x64xf32>, vector<64x32xf32>, vector<1x32xf32> -> vector<1x32xf32>
    %c0_33 = arith.constant 0 : index
    %c0_34 = arith.constant 0 : index
    %100 = vector.load %arg9[%c0_33, %c0_34] : memref<1x32xf32, #tpu.memory_space<vmem>>, vector<1x32xf32>
    %101 = arith.addf %99, %100 : vector<1x32xf32>
    %cst_35 = arith.constant 0.000000e+00 : f32
    %102 = vector.broadcast %cst_35 : f32 to vector<1x32xf32>
    %103 = arith.maximumf %101, %102 : vector<1x32xf32>
    %c0_36 = arith.constant 0 : index
    %c0_37 = arith.constant 0 : index
    %104 = vector.load %arg10[%c0_36, %c0_37] : memref<32x8xf32, #tpu.memory_space<vmem>>, vector<32x8xf32>
    %cst_38 = arith.constant dense<0.000000e+00> : vector<1x8xf32>
    %105 = tpu.matmul %103, %104, %cst_38 {dimension_numbers = #tpu.dot_dimension_numbers<[1], [0], [0], [1], [0, 0, 1, 1], [], []>} : vector<1x32xf32>, vector<32x8xf32>, vector<1x8xf32> -> vector<1x8xf32>
    %c0_39 = arith.constant 0 : index
    %c0_40 = arith.constant 0 : index
    %106 = vector.load %arg11[%c0_39, %c0_40] : memref<1x8xf32, #tpu.memory_space<vmem>>, vector<1x8xf32>
    %107 = arith.addf %105, %106 : vector<1x8xf32>
    %c0_41 = arith.constant 0 : index
    %c0_42 = arith.constant 0 : index
    %c0_43 = arith.constant 0 : index
    %108 = vector.load %arg12[%c0_41, %c0_42, %c0_43] : memref<1x1x8xf32, #tpu.memory_space<vmem>>, vector<1x1x8xf32>
    %109 = vector.shape_cast %108 : vector<1x1x8xf32> to vector<1x8xf32>
    %110 = vector.shape_cast %107 : vector<1x8xf32> to vector<1x1x8xf32>
    tpu.vector_store %arg12[%c0_41, %c0_42, %c0_43], %110 {strides = array<i32>} : memref<1x1x8xf32, #tpu.memory_space<vmem>>, vector<1x1x8xf32>,
    return
  }
  func.func @transform_0(%arg0: i32) -> (i32, i32, i32) {
    %c0_i32 = arith.constant 0 : i32
    %c0_i32_0 = arith.constant 0 : i32
    %c0_i32_1 = arith.constant 0 : i32
    return %arg0, %c0_i32, %c0_i32_0 : i32, i32, i32
  }
  func.func @transform_1(%arg0: i32) -> (i32, i32) {
    %c0_i32 = arith.constant 0 : i32
    %c0_i32_0 = arith.constant 0 : i32
    %c0_i32_1 = arith.constant 0 : i32
    return %c0_i32, %c0_i32_0 : i32, i32
  }
  func.func @transform_2(%arg0: i32) -> (i32, i32) {
    %c0_i32 = arith.constant 0 : i32
    %c0_i32_0 = arith.constant 0 : i32
    %c0_i32_1 = arith.constant 0 : i32
    return %c0_i32, %c0_i32_0 : i32, i32
  }
  func.func @transform_3(%arg0: i32) -> (i32, i32) {
    %c0_i32 = arith.constant 0 : i32
    %c0_i32_0 = arith.constant 0 : i32
    %c0_i32_1 = arith.constant 0 : i32
    return %c0_i32, %c0_i32_0 : i32, i32
  }
  func.func @transform_4(%arg0: i32) -> (i32, i32) {
    %c0_i32 = arith.constant 0 : i32
    %c0_i32_0 = arith.constant 0 : i32
    %c0_i32_1 = arith.constant 0 : i32
    return %c0_i32, %c0_i32_0 : i32, i32
  }
  func.func @transform_5(%arg0: i32) -> (i32, i32) {
    %c0_i32 = arith.constant 0 : i32
    %c0_i32_0 = arith.constant 0 : i32
    %c0_i32_1 = arith.constant 0 : i32
    return %c0_i32, %c0_i32_0 : i32, i32
  }
  func.func @transform_6(%arg0: i32) -> (i32, i32) {
    %c0_i32 = arith.constant 0 : i32
    %c0_i32_0 = arith.constant 0 : i32
    %c0_i32_1 = arith.constant 0 : i32
    return %c0_i32, %c0_i32_0 : i32, i32
  }
  func.func @transform_7(%arg0: i32) -> (i32, i32) {
    %c0_i32 = arith.constant 0 : i32
    %c0_i32_0 = arith.constant 0 : i32
    %c0_i32_1 = arith.constant 0 : i32
    return %c0_i32, %c0_i32_0 : i32, i32
  }
  func.func @transform_8(%arg0: i32) -> (i32, i32) {
    %c0_i32 = arith.constant 0 : i32
    %c0_i32_0 = arith.constant 0 : i32
    %c0_i32_1 = arith.constant 0 : i32
    return %c0_i32, %c0_i32_0 : i32, i32
  }
  func.func @transform_9(%arg0: i32) -> (i32, i32) {
    %c0_i32 = arith.constant 0 : i32
    %c0_i32_0 = arith.constant 0 : i32
    %c0_i32_1 = arith.constant 0 : i32
    return %c0_i32, %c0_i32_0 : i32, i32
  }
  func.func @transform_10(%arg0: i32) -> (i32, i32) {
    %c0_i32 = arith.constant 0 : i32
    %c0_i32_0 = arith.constant 0 : i32
    %c0_i32_1 = arith.constant 0 : i32
    return %c0_i32, %c0_i32_0 : i32, i32
  }
  func.func @transform_11(%arg0: i32) -> (i32, i32, i32) {
    %c0_i32 = arith.constant 0 : i32
    %c0_i32_0 = arith.constant 0 : i32
    %c0_i32_1 = arith.constant 0 : i32
    return %arg0, %c0_i32, %c0_i32_0 : i32, i32, i32
  }
}

</mosaic_0001>

<bundles_post_ra>
// kernel: observation_to_latent.1
= control target key start
LH: loop header
LB: loop body
LE: loop exit
PB: predicated region body
PF: predicated region fallthrough
CT: control target
= control target key end

     0   :  { %s3174_s0 = inlined_call_operand.vmem [shape: f32[2,36,256], index: 0, kind: input, shape index: {}]   ;;  %s3175_s1 = inlined_call_operand.vmem [shape: f32[16,36], index: 1, kind: input, shape index: {}]   ;;  %s3176_s2 = inlined_call_operand.vmem [shape: f32[16,1], index: 2, kind: input, shape index: {}]   ;;  %s3177_s3 = inlined_call_operand.vmem [shape: f32[16,144], index: 3, kind: input, shape index: {}]   ;;  %s3178_s4 = inlined_call_operand.vmem [shape: f32[16,1], index: 4, kind: input, shape index: {}]   ;;  %s3179_s5 = inlined_call_operand.vmem [shape: f32[256,1024], index: 5, kind: input, shape index: {}]   ;;  %s3180_s6 = inlined_call_operand.vmem [shape: f32[1,64], index: 6, kind: input, shape index: {}]   ;;  %s3181_s7 = inlined_call_operand.vmem [shape: f32[64,32], index: 7, kind: input, shape index: {}]   ;;  %s3182_s8 = inlined_call_operand.vmem [shape: f32[1,32], index: 8, kind: input, shape index: {}]   ;;  %s3183_s9 = inlined_call_operand.vmem [shape: f32[32,8], index: 9, kind: input, shape index: {}]   ;;  %s3184_s10 = inlined_call_operand.vmem [shape: f32[1,8], index: 10, kind: input, shape index: {}]   ;;  %s3185_s11 = inlined_call_operand.hbm [shape: f32[2,1,8], index: 11, kind: output, shape index: {}]  }
   0x1   :  { %3186 = sst [smem:[#allocation5_spill]] %s3174_s0 }
   0x2   :  { %3187 = sst [smem:[#allocation6_spill]] %s3175_s1 }
   0x3   :  { %16 = vsyncpa [#allocation3], 0 }
   0x4   :  { %18 = vsyncpa [#allocation3 + $0x1], 0  ;;  %s1958_s17 = smov 0   ;;  %s1960_s18 = smov 0  }
   0x5   :  { %s1962_s19 = smov 0   ;;  %s1964_s20 = smov 0  }
   0x6 LB: > { %s1979_s21 = sadd.s32 4294967295, %s1885_s20   ;;  %s1682_s22 = sadd.s32 4294967294, %s1885_s20   ;;  %s1885_s20 = sphi %s1964_s20, %s3203_s20   ;;  %s1881_s19 = sphi %s1962_s19, %s3202_s19   ;;  %s1877_s18 = sphi %s1960_s18, %s3201_s18   ;;  %s1873_s17 = sphi %s1958_s17, %s3200_s17  }
   0x7   : > { %s1983_s23 = sadd.s32 1, %s1885_s20   ;;  %s267_s24 = sadd.s32 1, %s1881_s19 }
   0x8   : > { %s264_s25 = ssub.s32 %s1885_s20, %s1983_s23  ;;  %p277_p0 = scmp.ne.s32.totalorder %s1881_s19, %s1877_s18 }
   0x9   : > { %p265_p1 = scmp.eq.s32.totalorder %s264_s25, 0  ;;  %p278_p2 = scmp.eq.s32.totalorder %s1979_s21, 1 }
   0xa   : > { %p283_p3 = scmp.ne.s32.totalorder %s1877_s18, %s1873_s17  ;;  %p284_p4 = scmp.eq.s32.totalorder %s1682_s22, 1 }
   0xb   : > { %s1994_s26 = scalar_select %p265_p1, %s1881_s19, %s267_s24  }
   0xc   : > { %p1996_p5 = por %p278_p2, %p277_p0  ;;  %p2000_p6 = por %p284_p4, %p283_p3 }
   0xd   : > { %p1685_p7 = scmp.ge.s32.totalorder %s1885_s20, 1  ;;  %p340_p8 = scmp.lt.s32.totalorder %s1885_s20, 3 }
   0xf   : > { %p341_p9 = pnand %p1685_p7, %p340_p8 }
  0x10   : > { %p379_p10 = scmp.lt.s32.totalorder (!%p341_p9), %s1979_s21, 1  ;;  %s3190_s0 = sld [smem:[#allocation5_spill]] (!%p341_p9) }
  0x11   : > { %344 = sbr.rel (%p341_p9) target bundleno = 1243 (0x4db), region = 64  ;;  %s3191_s1 = sld [smem:[#allocation6_spill]] (!%p341_p9) }
  0x12   : > { %s1889_s14 = smov (!%p341_p9), 96   ;;  %s1890_s15 = smov (!%p341_p9), 110  }
  0x13   : > { %s1892_s22 = smov (!%p341_p9), 111   ;;  %s1893_s24 = smov (!%p341_p9), 112  }
  0x14   : > { %s1894_s25 = smov (!%p341_p9), 94   ;;  %s1895_s29 = smov (!%p341_p9), 126  }
  0x15   : > { %s1896_s30 = smov (!%p341_p9), 127  }
  0x16   : > { %v397_v0 = vld [vmem:[%s3176_s2 + $0x8] sm:$0xff]  ;;  %v1887_v1 = vmov 0   ;;  %s380_s12 = scalar_select %p379_p10, %s1979_s21, 1  ;;  %vm415_vm0 = vcmask 1043456   ;;  %v396_v6 = vld [vmem:[%s3176_s2] sm:$0xff]  ;;  %vm408_vm1 = vcmask 293888  }
  0x17   : > { %1776 = vset.pattern.permute.xlu0 %v1887_v1  ;;  %1822 = vset.pattern.permute.xlu1 %v1887_v1  ;;  %v394_v13 = vld [vmem:[%s3191_s1] sm:$0xff]  ;;  %v395_v14 = vld [vmem:[%s3191_s1 + $0x8] sm:$0xff]  ;;  %vm484_vm2 = vcmask 138240   ;;  %vm623_vm3 = vcmask 785408   ;;  %vm598_vm4 = vcmask 900096   ;;  %v497_v1 = vlaneseq }
  0x18   : > { %405 = vperm.xlu0 %1776, %v397_v0   ;;  %s1725_s13 = smul.u32 80, %s380_s12  ;;  %v728_v43 = vld [vmem:[%s3178_s4] sm:$0xff]  ;;  %vm715_vm5 = vcmask 777216   ;;  %vm694_vm8 = vcmask 908288   ;;  %vm648_vm9 = vcmask 769024   ;;  %vm740_vm10 = vcmask 130048  }
  0x19   : > { %vm573_vm12 = vcmask 916480   ;;  %vm548_vm14 = vcmask 1031168   ;;  %vm673_vm15 = vcmask 1039360  }
  0x1a   : > { %s383_s16 = scalar_lea.vmem %s3190_s0, %s1725_s13  ;;  %s1888_s13 = smov 17  }
  0x1b   : > { %v392_v2 = vld [vmem:[%s383_s16 + $0x40] sm:$0xf]  ;;  %v393_v3 = vld [vmem:[%s383_s16 + $0x48] sm:$0xf]  ;;  %v390_v4 = vld [vmem:[%s383_s16 + $0x30] sm:$0xff] }
  0x1c   : > { %1687 = vmatpush.msk.msra.mxu0 %vm415_vm0, %v392_v2  ;;  %1690 = vmatpush.msk.msra.mxu1 %vm415_vm0, %v393_v3  ;;  %v391_v5 = vld [vmem:[%s383_s16 + $0x38] sm:$0xff]  ;;  %v388_v7 = vld [vmem:[%s383_s16 + $0x20] sm:$0xff]  ;;  %v389_v8 = vld [vmem:[%s383_s16 + $0x28] sm:$0xff]  ;;  %v498_v3 = vand.u32 127, %v497_v1  ;;  %vm1558_vm0 = vcmask 523264  }
  0x1d   : > { %v386_v9 = vld [vmem:[%s383_s16 + $0x10] sm:$0xff]  ;;  %v387_v10 = vld [vmem:[%s383_s16 + $0x18] sm:$0xff]  ;;  %v384_v11 = vld [vmem:[%s383_s16] sm:$0xff] }
  0x1e   : > { %434 = vmatpush.msra.mxu0 %v390_v4  ;;  %457 = vmatpush.msra.mxu1 %v391_v5  ;;  %v385_v12 = vld [vmem:[%s383_s16 + $0x8] sm:$0xff]  ;;  %s1891_s16 = smov 95  }
  0x20   : > { %400 = vperm.xlu0 %1776, %v396_v6   ;;  %435 = vmatpush.msra.mxu0 %v388_v7 }
  0x21   : > { %458 = vmatpush.msra.mxu1 %v389_v8 }
  0x22   : > { %436 = vmatpush.msra.mxu0 %v386_v9  ;;  %v504_v9 = vand.u32 15, %v498_v3 }
  0x23   : > { %459 = vmatpush.msra.mxu1 %v387_v10 }
  0x24   : > { %437 = vmatpush.msra.mxu0 %v384_v11  ;;  %vm2120_vm6 = vcmp.ne.s32.totalorder %v504_v9, 0  ;;  %vm2132_vm7 = vcmp.ne.s32.totalorder %v504_v9, 15  ;;  %v1091_v11 = vld [vmem:[%s3179_s5 + $0x7c0] sm:$0xff] }
  0x25   : > { %460 = vmatpush.msra.mxu1 %v385_v12  ;;  %1688 = vmatmul.msk.f32.vlgmr.msra.gmra.mxu0 %vm408_vm1, %v394_v13 }
  0x26   : > { %1691 = vmatmul.msk.f32.vlgmr.msra.gmra.mxu1 %vm408_vm1, %v394_v13 }
  0x2d   : > { %1689 = vmatmul.msk.f32.gmra.mxu0 %vm408_vm1, %v395_v14 }
  0x2e   : > { %1692 = vmatmul.msk.f32.gmra.mxu1 %vm408_vm1, %v395_v14  ;;  %vm1588_vm1 = vcmask 261120  }
  0x8a   : > { %v406_v15 = vpop.permute.xlu0 %405 }
  0x92   : > { %v401_v16 = vpop.permute.xlu0 %400 }
  0xa2   : > { %v439_v17 = vpop.f32.mrf.mxu0 }
  0xa3   : > { %v440_v18 = vadd.f32 %v439_v17, %v401_v16  ;;  %v462_v19 = vpop.f32.mrf.mxu1 }
  0xa4   : > { %v463_v21 = vadd.f32 %v462_v19, %v401_v16 }
  0xa5   : > { %v468_v20 = vmax.f32 %v440_v18, 0.0 }
  0xa6   : > { %v469_v24 = vmax.f32 %v463_v21, 0.0 }
  0xa7   : > { %476 = vrot.lane.b32.xlu2 %v468_v20, %s1888_s13 }
  0xaa   : > { %v442_v22 = vpop.f32.mrf.mxu0 }
  0xab   : > { %v443_v23 = vadd.f32 %v442_v22, %v406_v15  ;;  %v465_v26 = vpop.f32.mrf.mxu1 }
  0xac   : > { %v466_v27 = vadd.f32 %v465_v26, %v406_v15 }
  0xad   : > { %v470_v25 = vmax.f32 %v443_v23, 0.0 }
  0xae   : > { %v471_v28 = vmax.f32 %v466_v27, 0.0 }
  0xaf   : > { %480 = vrot.lane.b32.xlu1 %v470_v25, %s1888_s13  ;;  %478 = vrot.lane.b32.xlu2 %v469_v24, %s1888_s13  ;;  %v499_v25 = vadd.s32 128, %v498_v3 }
  0xb7   : > { %482 = vrot.lane.b32.xlu1 %v471_v28, %s1888_s13 }
 0x101   : > { %v477_v29 = vpop.permute.xlu2 %476 }
 0x102   : > { %v2024_v30 = vsel %vm484_vm2, 0.0, %v477_v29 }
 0x103   : > { %611 = vrot.lane.b32.xlu0 %v2024_v30, %s1889_s14 }
 0x109   : > { %v479_v31 = vpop.permute.xlu2 %478 }
 0x10a   : > { %v2029_v32 = vsel %vm484_vm2, %v477_v29, %v479_v31  ;;  %v495_v33 = vsel %vm484_vm2, %v479_v31, 0.0 }
 0x10b   : > { %586 = vrot.lane.b32.xlu0 %v2024_v30, %s1890_s15  ;;  %613 = vrot.lane.b32.xlu1 %v2029_v32, %s1889_s14  ;;  %v1777_v34 = vpack.i.bf16 %v495_v33, %v2029_v32 }
 0x10d   : > { %1778 = vrot.lane.b32.xlu2 %v1777_v34, %s1891_s16 }
 0x113   : > { %1783 = vrot.lane.b32.xlu0 %v1777_v34, %s1892_s22  ;;  %588 = vrot.lane.b32.xlu1 %v2029_v32, %s1890_s15 }
 0x115   : > { %615 = vrot.lane.b32.xlu2 %v495_v33, %s1889_s14 }
 0x11b   : > { %565 = vrot.lane.b32.xlu0 %v495_v33, %s1893_s24  ;;  %636 = vrot.lane.b32.xlu1 %v2024_v30, %s1894_s25 }
 0x11d   : > { %590 = vrot.lane.b32.xlu2 %v495_v33, %s1890_s15 }
 0x121   : > { %v481_v35 = vpop.permute.xlu1 %480 }
 0x122   : > { %v2050_v37 = vsel %vm484_vm2, 0.0, %v481_v35 }
 0x123   : > { %540 = vrot.lane.b32.xlu0 %v495_v33, %s1895_s29  ;;  %561 = vrot.lane.b32.xlu1 %v2024_v30, %s1893_s24 }
 0x125   : > { %638 = vrot.lane.b32.xlu2 %v2029_v32, %s1894_s25 }
 0x129   : > { %v483_v36 = vpop.permute.xlu1 %482 }
 0x12a   : > { %v2053_v38 = vsel %vm484_vm2, %v481_v35, %v483_v36  ;;  %v496_v40 = vsel %vm484_vm2, %v483_v36, 0.0  ;;  %vm1612_vm2 = vcmask 57344  }
 0x12b   : > { %536 = vrot.lane.b32.xlu1 %v2024_v30, %s1895_s29  ;;  %v1787_v39 = vpack.i.bf16 %v2053_v38, %v2050_v37  ;;  %v1792_v41 = vpack.i.bf16 %v2024_v30, %v496_v40 }
 0x12d   : > { %1788 = vrot.lane.b32.xlu0 %v1787_v39, %s1891_s16  ;;  %563 = vrot.lane.b32.xlu2 %v2029_v32, %s1893_s24 }
 0x133   : > { %1793 = vrot.lane.b32.xlu1 %v1792_v41, %s1891_s16  ;;  %s1897_s16 = smov 64  }
 0x135   : > { %617 = vrot.lane.b32.xlu0 %v2050_v37, %s1889_s14  ;;  %538 = vrot.lane.b32.xlu2 %v2029_v32, %s1895_s29 }
 0x13b   : > { %619 = vrot.lane.b32.xlu1 %v2053_v38, %s1889_s14 }
 0x13d   : > { %592 = vrot.lane.b32.xlu0 %v2050_v37, %s1890_s15  ;;  %621 = vrot.lane.b32.xlu2 %v496_v40, %s1889_s14 }
 0x143   : > { %594 = vrot.lane.b32.xlu1 %v2053_v38, %s1890_s15 }
 0x145   : > { %642 = vrot.lane.b32.xlu0 %v2050_v37, %s1894_s25  ;;  %596 = vrot.lane.b32.xlu2 %v496_v40, %s1890_s15  ;;  %s377_s15 = sand.u32 1, %s1877_s18  }
 0x146   : > { %s1615_s13 = scalar_lea.sflag [#allocation3], %s377_s15 }
 0x14b   : > { %644 = vrot.lane.b32.xlu1 %v2053_v38, %s1894_s25 }
 0x14d   : > { %1803 = vrot.lane.b32.xlu0 %v1792_v41, %s1892_s22  ;;  %1798 = vrot.lane.b32.xlu2 %v1787_v39, %s1892_s22  ;;  %s1843_s22 = scalar_lea.hbm %s3185_s11, 2 }
 0x153   : > { %567 = vrot.lane.b32.xlu1 %v2050_v37, %s1893_s24 }
 0x155   : > { %571 = vrot.lane.b32.xlu0 %v496_v40, %s1893_s24  ;;  %569 = vrot.lane.b32.xlu2 %v2053_v38, %s1893_s24  ;;  %s1623_s24 = scalar_lea.hbm %s3185_s11, %s1979_s21 }
 0x156   : > { %s1627_s0 = sshll.u32 %s1623_s24, 4  ;;  %s1628_s0 = int_to_ptr.hbm [resolvable:$true] %s1627_s0 }
 0x157   : > { %s1837_s14 = sshra.s32 %s1628_s0, 4  ;;  %s1838_s14 = int_to_ptr.hbm [resolvable:$true] %s1837_s14 }
 0x158   : > { %s1839_s1 = scalar_lea.hbm %s1838_s14, 1  ;;  %p1844_p0 = scmp.lt.s32.totalorder %s1838_s14, %s3185_s11 }
 0x159   : > { %p1840_p11 = scmp.ne.s32.totalorder %s1838_s14, %s1839_s1  ;;  %p1845_p1 = scmp.lt.s32.totalorder %s1843_s22, %s1839_s1 }
 0x15b   : > { %542 = vrot.lane.b32.xlu1 %v2050_v37, %s1895_s29  ;;  %p1841_p12 = pnand %p1840_p11, %p1996_p5  ;;  %p1846_p2 = por %p1845_p1, %p1844_p0 }
 0x15d   : > { %546 = vrot.lane.b32.xlu0 %v496_v40, %s1895_s29  ;;  %544 = vrot.lane.b32.xlu2 %v2053_v38, %s1895_s29  ;;  %p1842_p13 = pneg %p1841_p12 }
 0x15f   : > { %p1847_p3 = pnand %p1846_p2, %p1842_p13 }
 0x163   : > { %1808 = vrot.lane.b32.xlu1 %v1787_v39, %s1896_s30 }
 0x165   : > { %1818 = vrot.lane.b32.xlu0 %v1777_v34, %s1896_s30  ;;  %1813 = vrot.lane.b32.xlu2 %v1792_v41, %s1896_s30  ;;  %v511_v34 = vand.u32 15, %v499_v25  ;;  %s378_s30 = scalar_lea.vmem [#allocation2], %s377_s15 }
 0x166   : > { %s1625_s12 = sshll.u32 %s378_s30, 4  ;;  %s1626_s12 = int_to_ptr.vmem [resolvable:$true] %s1625_s12 }
 0x167   : > { %v2086_v42 = vpop.permute.xlu2 %1778  ;;  %vm2165_vm11 = vcmp.ne.s32.totalorder %v511_v34, 0  ;;  %vm2178_vm13 = vcmp.ne.s32.totalorder %v511_v34, 15 }
 0x168   : > { %v1780_v5 = vunpack.i.l.bf16 %v2086_v42  ;;  %v1781_v29 = vunpack.i.h.bf16 %v2086_v42 }
 0x16b   : > { %646 = vrot.lane.b32.xlu1 %v496_v40, %s1894_s25  ;;  %v2158_v40 = vld [vmem:[%s3177_s3 + $0x8] sm:$0xff] }
 0x16d   : > { %732 = vperm.xlu0 %1776, %v728_v43   ;;  %640 = vrot.lane.b32.xlu2 %v495_v33, %s1894_s25  ;;  %v717_v43 = vsel %vm715_vm5, %v1780_v5, %v1781_v29 }
 0x16f   : > { %v616_v44 = vpop.permute.xlu2 %615 }
 0x175   : > { %v612_v45 = vpop.permute.xlu0 %611 }
 0x177   : > { %v591_v46 = vpop.permute.xlu2 %590 }
 0x17d   : > { %v587_v47 = vpop.permute.xlu0 %586  ;;  %v614_v48 = vpop.permute.xlu1 %613 }
 0x17e   : > { %v2094_v49 = vsel %vm623_vm3, %v614_v48, %v616_v44  ;;  %v624_v15 = vsel %vm623_vm3, %v612_v45, %v614_v48  ;;  %v940_v44 = vld [vmem:[%s3179_s5 + $0x308] sm:$0xff] }
 0x17f   : > { %v2096_v50 = vpop.permute.xlu2 %638 }
 0x185   : > { %v2098_v51 = vpop.permute.xlu0 %1783  ;;  %v589_v52 = vpop.permute.xlu1 %588 }
 0x186   : > { %v2101_v53 = vsel %vm598_vm4, %v589_v52, %v591_v46  ;;  %v599_v23 = vsel %vm598_vm4, %v587_v47, %v589_v52  ;;  %v1785_v35 = vunpack.i.l.bf16 %v2098_v51  ;;  %v1786_v1 = vunpack.i.h.bf16 %v2098_v51  ;;  %v947_v51 = vld [vmem:[%s3179_s5 + $0x340] sm:$0xff] }
 0x187   : > { %v2103_v54 = vpop.permute.xlu2 %563  ;;  %v859_v52 = vld [vmem:[%s3179_s5 + $0x80] sm:$0xff] }
 0x18d   : > { %v2105_v55 = vpop.permute.xlu0 %565  ;;  %v637_v56 = vpop.permute.xlu1 %636 }
 0x18e   : > { %v649_v39 = vsel %vm648_vm9, %v637_v56, %v2096_v50 }
 0x18f   : > { %v2107_v57 = vpop.permute.xlu2 %538 }
 0x195   : > { %v2109_v58 = vpop.permute.xlu1 %561  ;;  %v2111_v59 = vpop.permute.xlu0 %540 }
 0x196   : > { %v574_v56 = vsel %vm573_vm12, %v2109_v58, %v2103_v54  ;;  %v963_v58 = vld [vmem:[%s3179_s5 + $0x3c0] sm:$0xff] }
 0x197   : > { %v2115_v61 = vpop.permute.xlu2 %621  ;;  %1099 = vmatpush.msrb.mxu1 %v963_v58  ;;  %v1044_v58 = vld [vmem:[%s3179_s5 + $0x648] sm:$0xff] }
 0x19d   : > { %v2113_v60 = vpop.permute.xlu1 %536 }
 0x19f   : > { %v1789_v62 = vpop.permute.xlu0 %1788  ;;  %v597_v10 = vpop.permute.xlu2 %596 }
 0x1a0   : > { %v1791_v63 = vunpack.i.h.bf16 %v1789_v62  ;;  %v1790_v0 = vunpack.i.l.bf16 %v1789_v62 }
 0x1a2   : > { %v718_v2 = vsel %vm715_vm5, %v1790_v0, %v1791_v63 }
 0x1a3   : > { %747 = vmatpush.msra.mxu2 %v718_v2  ;;  %v955_v2 = vld [vmem:[%s3179_s5 + $0x380] sm:$0xff] }
 0x1a4   : > { %1100 = vmatpush.msrb.mxu1 %v955_v2  ;;  %v1043_v2 = vld [vmem:[%s3179_s5 + $0x640] sm:$0xff] }
 0x1a5   : > { %v1794_v4 = vpop.permute.xlu1 %1793 }
 0x1a6   : > { %v1796_v6 = vunpack.i.h.bf16 %v1794_v4  ;;  %v1795_v26 = vunpack.i.l.bf16 %v1794_v4  ;;  %1101 = vmatpush.msrb.mxu1 %v947_v51  ;;  %v965_v51 = vld [vmem:[%s3179_s5 + $0x3d0] sm:$0xff] }
 0x1a7   : > { %v618_v7 = vpop.permute.xlu0 %617  ;;  %v2130_v16 = vpop.permute.xlu2 %1798 }
 0x1a8   : > { %v716_v8 = vsel %vm715_vm5, %v1796_v6, %v1780_v5  ;;  %v1801_v19 = vunpack.i.h.bf16 %v2130_v16  ;;  %v1800_v20 = vunpack.i.l.bf16 %v2130_v16  ;;  %v719_v41 = vsel %vm715_vm5, %v1791_v63, %v1795_v26  ;;  %v915_v16 = vld [vmem:[%s3179_s5 + $0x240] sm:$0xff] }
 0x1a9   : > { %748 = vmatpush.msra.mxu2 %v716_v8  ;;  %v549_v8 = vsel %vm548_vm14, %v2113_v60, %v2107_v57  ;;  %v923_v60 = vld [vmem:[%s3179_s5 + $0x280] sm:$0xff] }
 0x1aa   : > { %v697_v24 = vsel %vm694_vm8, %v1800_v20, %v1801_v19  ;;  %v550_v20 = vsel %vm548_vm14, %v2107_v57, %v2111_v59  ;;  %v899_v26 = vld [vmem:[%s3179_s5 + $0x1c0] sm:$0xff] }
 0x1ad   : > { %v620_v12 = vpop.permute.xlu1 %619 }
 0x1ae   : > { %v626_v13 = vsel %vm623_vm3, %v618_v7, %v620_v12  ;;  %v627_v46 = vsel %vm623_vm3, %v620_v12, %v2115_v61  ;;  %v2191_v61 = vld [vmem:[%s3177_s3 + $0x18] sm:$0xff]  ;;  %v696_v7 = vsel %vm694_vm8, %v1785_v35, %v1786_v1  ;;  %v843_v1 = vld [vmem:[%s3179_s5] sm:$0xff] }
 0x1af   : > { %v593_v14 = vpop.permute.xlu0 %592  ;;  %1693 = vmatpush.msk.msra.mxu2 %vm2120_vm6, %v626_v13  ;;  %v570_v31 = vpop.permute.xlu2 %569  ;;  %v575_v13 = vsel %vm573_vm12, %v2103_v54, %v2105_v55 }
 0x1b1   : > { %1694 = vmatpush.msk.msra.mxu2 %vm2120_vm6, %v624_v15 }
 0x1b5   : > { %v595_v18 = vpop.permute.xlu1 %594 }
 0x1b6   : > { %v601_v21 = vsel %vm598_vm4, %v593_v14, %v595_v18  ;;  %v602_v0 = vsel %vm598_vm4, %v595_v18, %v597_v10  ;;  %v931_v10 = vld [vmem:[%s3179_s5 + $0x2c0] sm:$0xff] }
 0x1b7   : > { %v643_v22 = vpop.permute.xlu0 %642  ;;  %1695 = vmatpush.msk.msra.mxu2 %vm2132_vm7, %v601_v21  ;;  %v545_v62 = vpop.permute.xlu2 %544  ;;  %v907_v21 = vld [vmem:[%s3179_s5 + $0x200] sm:$0xff] }
 0x1b9   : > { %1696 = vmatpush.msk.msra.mxu2 %vm2132_vm7, %v599_v23 }
 0x1bb   : > { %753 = vmatpush.msra.mxu2 %v697_v24 }
 0x1bd   : > { %v2145_v27 = vpop.permute.xlu1 %644 }
 0x1be   : > { %v651_v28 = vsel %vm648_vm9, %v643_v22, %v2145_v27 }
 0x1bf   : > { %v1804_v33 = vpop.permute.xlu0 %1803  ;;  %1703 = vmatpush.msk.msra.mxu3 %vm2132_vm7, %v651_v28  ;;  %v1814_v12 = vpop.permute.xlu2 %1813  ;;  %v891_v28 = vld [vmem:[%s3179_s5 + $0x180] sm:$0xff] }
 0x1c0   : > { %v1806_v36 = vunpack.i.h.bf16 %v1804_v33  ;;  %v1805_v63 = vunpack.i.l.bf16 %v1804_v33  ;;  %v1815_v17 = vunpack.i.l.bf16 %v1814_v12  ;;  %v1816_v54 = vunpack.i.h.bf16 %v1814_v12  ;;  %v724_v33 = vld [vmem:[%s3177_s3] sm:$0xff]  ;;  %v949_v12 = vld [vmem:[%s3179_s5 + $0x350] sm:$0xff] }
 0x1c1   : > { %1704 = vmatpush.msk.msra.mxu3 %vm2132_vm7, %v649_v39  ;;  %v875_v39 = vld [vmem:[%s3179_s5 + $0x100] sm:$0xff] }
 0x1c2   : > { %v695_v42 = vsel %vm694_vm8, %v1806_v36, %v1785_v35  ;;  %1705 = vmatmul.msk.f32.vlgmr.msra.gmra.mxu3 %vm740_vm10, %v2158_v40  ;;  %v698_v4 = vsel %vm694_vm8, %v1801_v19, %v1805_v63  ;;  %v1084_v35 = vld [vmem:[%s3179_s5 + $0x788] sm:$0xff] }
 0x1c3   : > { %793 = vmatpush.msrb.mxu3 %v719_v41  ;;  %754 = vmatpush.msra.mxu2 %v695_v42  ;;  %v948_v36 = vld [vmem:[%s3179_s5 + $0x348] sm:$0xff]  ;;  %v726_v42 = vld [vmem:[%s3177_s3 + $0x10] sm:$0xff] }
 0x1c4   : > { %v1076_v41 = vld [vmem:[%s3179_s5 + $0x748] sm:$0xff] }
 0x1c5   : > { %794 = vmatpush.msrb.mxu3 %v717_v43  ;;  %v568_v45 = vpop.permute.xlu1 %567  ;;  %v867_v43 = vld [vmem:[%s3179_s5 + $0xc0] sm:$0xff]  ;;  %v1052_v63 = vld [vmem:[%s3179_s5 + $0x688] sm:$0xff] }
 0x1c6   : > { %v576_v47 = vsel %vm573_vm12, %v568_v45, %v570_v31  ;;  %v1068_v45 = vld [vmem:[%s3179_s5 + $0x708] sm:$0xff] }
 0x1c7   : > { %1707 = vmatpush.msk.msrb.mxu3 %vm2165_vm11, %v627_v46  ;;  %v572_v48 = vpop.permute.xlu0 %571  ;;  %1697 = vmatpush.msk.msra.mxu2 %vm2120_vm6, %v576_v47  ;;  %v641_v29 = vpop.permute.xlu2 %640  ;;  %v1067_v46 = vld [vmem:[%s3179_s5 + $0x700] sm:$0xff]  ;;  %v932_v47 = vld [vmem:[%s3179_s5 + $0x2c8] sm:$0xff] }
 0x1c8   : > { %v577_v9 = vsel %vm573_vm12, %v570_v31, %v572_v48  ;;  %v1060_v48 = vld [vmem:[%s3179_s5 + $0x6c8] sm:$0xff] }
 0x1c9   : > { %1708 = vmatpush.msk.msrb.mxu3 %vm2165_vm11, %v2094_v49  ;;  %1698 = vmatpush.msk.msra.mxu2 %vm2120_vm6, %v574_v56  ;;  %v729_v49 = vld [vmem:[%s3178_s4 + $0x8] sm:$0xff]  ;;  %v1059_v56 = vld [vmem:[%s3179_s5 + $0x6c0] sm:$0xff] }
 0x1ca   : > { %1706 = vmatmul.msk.f32.gmra.mxu3 %vm740_vm10, %v2191_v61  ;;  %737 = vperm.xlu1 %1822, %v729_v49   ;;  %v916_v49 = vld [vmem:[%s3179_s5 + $0x248] sm:$0xff] }
 0x1cb   : > { %1709 = vmatpush.msk.msrb.mxu3 %vm2178_vm13, %v602_v0  ;;  %v851_v0 = vld [vmem:[%s3179_s5 + $0x40] sm:$0xff] }
 0x1cd   : > { %1710 = vmatpush.msk.msrb.mxu3 %vm2178_vm13, %v2101_v53  ;;  %v543_v3 = vpop.permute.xlu1 %542  ;;  %v939_v53 = vld [vmem:[%s3179_s5 + $0x300] sm:$0xff] }
 0x1ce   : > { %v551_v5 = vsel %vm548_vm14, %v543_v3, %v545_v62  ;;  %1102 = vmatpush.msrb.mxu1 %v939_v53  ;;  %v908_v3 = vld [vmem:[%s3179_s5 + $0x208] sm:$0xff]  ;;  %v957_v53 = vld [vmem:[%s3179_s5 + $0x390] sm:$0xff] }
 0x1cf   : > { %799 = vmatpush.msrb.mxu3 %v698_v4  ;;  %v547_v6 = vpop.permute.xlu0 %546  ;;  %1699 = vmatpush.msk.msra.mxu2 %vm2132_vm7, %v551_v5  ;;  %v1036_v4 = vld [vmem:[%s3179_s5 + $0x608] sm:$0xff]  ;;  %v1035_v5 = vld [vmem:[%s3179_s5 + $0x600] sm:$0xff] }
 0x1d0   : > { %1103 = vmatpush.msrb.mxu1 %v931_v10  ;;  %v552_v15 = vsel %vm548_vm14, %v545_v62, %v547_v6  ;;  %v924_v62 = vld [vmem:[%s3179_s5 + $0x288] sm:$0xff] }
 0x1d1   : > { %800 = vmatpush.msrb.mxu3 %v696_v7  ;;  %1700 = vmatpush.msk.msra.mxu2 %vm2132_vm7, %v549_v8  ;;  %v900_v6 = vld [vmem:[%s3179_s5 + $0x1c8] sm:$0xff]  ;;  %v1027_v8 = vld [vmem:[%s3179_s5 + $0x5c0] sm:$0xff] }
 0x1d2   : > { %1104 = vmatpush.msrb.mxu1 %v923_v60  ;;  %v1028_v7 = vld [vmem:[%s3179_s5 + $0x5c8] sm:$0xff] }
 0x1d3   : > { %1711 = vmatpush.msk.msrb.mxu3 %vm2165_vm11, %v577_v9  ;;  %v892_v9 = vld [vmem:[%s3179_s5 + $0x188] sm:$0xff] }
 0x1d4   : > { %1105 = vmatpush.msrb.mxu1 %v915_v16  ;;  %v1020_v10 = vld [vmem:[%s3179_s5 + $0x588] sm:$0xff]  ;;  %v1011_v16 = vld [vmem:[%s3179_s5 + $0x540] sm:$0xff] }
 0x1d5   : > { %1712 = vmatpush.msk.msrb.mxu3 %vm2165_vm11, %v575_v13  ;;  %v1809_v14 = vpop.permute.xlu1 %1808  ;;  %v1019_v13 = vld [vmem:[%s3179_s5 + $0x580] sm:$0xff]  ;;  %v884_v60 = vld [vmem:[%s3179_s5 + $0x148] sm:$0xff] }
 0x1d6   : > { %v1811_v18 = vunpack.i.h.bf16 %v1809_v14  ;;  %v1810_v19 = vunpack.i.l.bf16 %v1809_v14  ;;  %1106 = vmatpush.msrb.mxu1 %v907_v21  ;;  %v1012_v14 = vld [vmem:[%s3179_s5 + $0x548] sm:$0xff]  ;;  %v995_v21 = vld [vmem:[%s3179_s5 + $0x4c0] sm:$0xff] }
 0x1d7   : > { %1713 = vmatpush.msk.msrb.mxu3 %vm2178_vm13, %v552_v15  ;;  %v1819_v55 = vpop.permute.xlu0 %1818  ;;  %v941_v15 = vld [vmem:[%s3179_s5 + $0x310] sm:$0xff] }
 0x1d8   : > { %v1821_v22 = vunpack.i.h.bf16 %v1819_v55  ;;  %v1820_v23 = vunpack.i.l.bf16 %v1819_v55  ;;  %v676_v24 = vsel %vm673_vm15, %v1810_v19, %v1811_v18  ;;  %v677_v25 = vsel %vm673_vm15, %v1811_v18, %v1815_v17  ;;  %1107 = vmatpush.msrb.mxu1 %v899_v26  ;;  %v876_v17 = vld [vmem:[%s3179_s5 + $0x108] sm:$0xff]  ;;  %v933_v19 = vld [vmem:[%s3179_s5 + $0x2d0] sm:$0xff] }
 0x1d9   : > { %1714 = vmatpush.msk.msrb.mxu3 %vm2178_vm13, %v550_v20  ;;  %759 = vmatpush.msra.mxu2 %v676_v24  ;;  %v1004_v18 = vld [vmem:[%s3179_s5 + $0x508] sm:$0xff]  ;;  %v987_v24 = vld [vmem:[%s3179_s5 + $0x480] sm:$0xff] }
 0x1da   : > { %v674_v57 = vsel %vm673_vm15, %v1816_v54, %v1820_v23  ;;  %v675_v59 = vsel %vm673_vm15, %v1820_v23, %v1821_v22  ;;  %1108 = vmatpush.msrb.mxu1 %v891_v28  ;;  %v1003_v54 = vld [vmem:[%s3179_s5 + $0x500] sm:$0xff]  ;;  %v868_v55 = vld [vmem:[%s3179_s5 + $0xc8] sm:$0xff] }
 0x1db   : > { %805 = vmatpush.msrb.mxu3 %v677_v25  ;;  %760 = vmatpush.msra.mxu2 %v674_v57  ;;  %v996_v20 = vld [vmem:[%s3179_s5 + $0x4c8] sm:$0xff]  ;;  %v979_v57 = vld [vmem:[%s3179_s5 + $0x440] sm:$0xff] }
 0x1dc   : > { %v860_v22 = vld [vmem:[%s3179_s5 + $0x88] sm:$0xff] }
 0x1dd   : > { %806 = vmatpush.msrb.mxu3 %v675_v59  ;;  %v647_v31 = vpop.permute.xlu1 %646  ;;  %1701 = vmatpush.msk.msra.mxu2 %vm2120_vm6, %v2050_v37  ;;  %v964_v37 = vld [vmem:[%s3179_s5 + $0x3c8] sm:$0xff] }
 0x1de   : > { %v652_v34 = vsel %vm648_vm9, %v2145_v27, %v647_v31  ;;  %v956_v27 = vld [vmem:[%s3179_s5 + $0x388] sm:$0xff]  ;;  %v971_v31 = vld [vmem:[%s3179_s5 + $0x400] sm:$0xff] }
 0x1df   : > { %1715 = vmatpush.msk.msrb.mxu3 %vm2165_vm11, %v2053_v38  ;;  %1702 = vmatpush.msk.msra.mxu2 %vm2120_vm6, %v2024_v30  ;;  %v650_v38 = vsel %vm648_vm9, %v2096_v50, %v641_v29  ;;  %v1092_v30 = vld [vmem:[%s3179_s5 + $0x7c8] sm:$0xff]  ;;  %v1083_v50 = vld [vmem:[%s3179_s5 + $0x780] sm:$0xff]  ;;  %v966_v29 = vld [vmem:[%s3179_s5 + $0x3d8] sm:$0xff] }
 0x1e0   : > { %1717 = vmatpush.msk.msrb.mxu0 %vm2178_vm13, %v652_v34  ;;  %763 = vmatmul.f32.vlgmr.msra.gmra.mxu2 %v724_v33  ;;  %v988_v23 = vld [vmem:[%s3179_s5 + $0x488] sm:$0xff]  ;;  %v1093_v34 = vld [vmem:[%s3179_s5 + $0x7d0] sm:$0xff] }
 0x1e1   : > { %1716 = vmatpush.msk.msrb.mxu3 %vm2165_vm11, %v2029_v32  ;;  %v883_v32 = vld [vmem:[%s3179_s5 + $0x140] sm:$0xff]  ;;  %1143 = vmatpush.msrb.mxu2 %v964_v37  ;;  %v852_v25 = vld [vmem:[%s3179_s5 + $0x48] sm:$0xff]  ;;  %v958_v37 = vld [vmem:[%s3179_s5 + $0x398] sm:$0xff] }
 0x1e2   : > { %809 = vmatmul.f32.vlgmr.msrb.gmra.mxu3 %v724_v33  ;;  %1718 = vmatpush.msk.msrb.mxu0 %vm2178_vm13, %v650_v38  ;;  %v980_v26 = vld [vmem:[%s3179_s5 + $0x448] sm:$0xff]  ;;  %v1094_v33 = vld [vmem:[%s3179_s5 + $0x7d8] sm:$0xff] }
 0x1e3   : > { %1719 = vmatmul.msk.f32.vlgmr.msrb.gmra.mxu0 %vm740_vm10, %v2158_v40  ;;  %1165 = vmatpush.msra.mxu3 %v1092_v30  ;;  %v1075_v40 = vld [vmem:[%s3179_s5 + $0x740] sm:$0xff]  ;;  %v844_v59 = vld [vmem:[%s3179_s5 + $0x8] sm:$0xff]  ;;  %v1086_v38 = vld [vmem:[%s3179_s5 + $0x798] sm:$0xff] }
 0x1e4   : > { %1121 = vmatpush.msra.mxu0 %v1091_v11  ;;  %1144 = vmatpush.msrb.mxu2 %v956_v27  ;;  %v972_v28 = vld [vmem:[%s3179_s5 + $0x408] sm:$0xff]  ;;  %v1085_v11 = vld [vmem:[%s3179_s5 + $0x790] sm:$0xff]  ;;  %v950_v30 = vld [vmem:[%s3179_s5 + $0x358] sm:$0xff] }
 0x1e5   : > { %1109 = vmatpush.msrb.mxu1 %v883_v32  ;;  %1166 = vmatpush.msra.mxu3 %v1084_v35  ;;  %v1078_v27 = vld [vmem:[%s3179_s5 + $0x758] sm:$0xff]  ;;  %v1077_v32 = vld [vmem:[%s3179_s5 + $0x750] sm:$0xff] }
 0x1e6   : > { %1122 = vmatpush.msra.mxu0 %v1083_v50  ;;  %1145 = vmatpush.msrb.mxu2 %v948_v36  ;;  %v942_v50 = vld [vmem:[%s3179_s5 + $0x318] sm:$0xff]  ;;  %v1069_v36 = vld [vmem:[%s3179_s5 + $0x710] sm:$0xff] }
 0x1e7   : > { %1110 = vmatpush.msrb.mxu1 %v875_v39  ;;  %1167 = vmatpush.msra.mxu3 %v1076_v41  ;;  %v1070_v35 = vld [vmem:[%s3179_s5 + $0x718] sm:$0xff] }
 0x1e8   : > { %1123 = vmatpush.msra.mxu0 %v1075_v40  ;;  %766 = vmatmul.f32.gmra.mxu2 %v726_v42  ;;  %v934_v39 = vld [vmem:[%s3179_s5 + $0x2d8] sm:$0xff]  ;;  %v1061_v40 = vld [vmem:[%s3179_s5 + $0x6d0] sm:$0xff] }
 0x1e9   : > { %1111 = vmatpush.msrb.mxu1 %v867_v43  ;;  %1146 = vmatpush.msrb.mxu2 %v940_v44  ;;  %v1062_v41 = vld [vmem:[%s3179_s5 + $0x6d8] sm:$0xff]  ;;  %v1053_v44 = vld [vmem:[%s3179_s5 + $0x690] sm:$0xff] }
 0x1ea   : > { %812 = vmatmul.f32.gmra.mxu3 %v726_v42  ;;  %1124 = vmatpush.msra.mxu0 %v1067_v46  ;;  %v925_v42 = vld [vmem:[%s3179_s5 + $0x290] sm:$0xff]  ;;  %v926_v43 = vld [vmem:[%s3179_s5 + $0x298] sm:$0xff] }
 0x1eb   : > { %1720 = vmatmul.msk.f32.gmra.mxu0 %vm740_vm10, %v2191_v61  ;;  %1168 = vmatpush.msra.mxu3 %v1068_v45  ;;  %v1051_v61 = vld [vmem:[%s3179_s5 + $0x680] sm:$0xff]  ;;  %v1054_v45 = vld [vmem:[%s3179_s5 + $0x698] sm:$0xff]  ;;  %v917_v46 = vld [vmem:[%s3179_s5 + $0x250] sm:$0xff] }
 0x1ec   : > { %1147 = vmatpush.msrb.mxu2 %v932_v47  ;;  %1112 = vmatpush.msrb.mxu1 %v859_v52  ;;  %v918_v47 = vld [vmem:[%s3179_s5 + $0x258] sm:$0xff] }
 0x1ed   : > { %1169 = vmatpush.msra.mxu3 %v1060_v48  ;;  %1125 = vmatpush.msra.mxu0 %v1059_v56  ;;  %v1045_v48 = vld [vmem:[%s3179_s5 + $0x650] sm:$0xff]  ;;  %v1046_v52 = vld [vmem:[%s3179_s5 + $0x658] sm:$0xff] }
 0x1ee   : > { %1148 = vmatpush.msrb.mxu2 %v924_v62  ;;  %1113 = vmatpush.msrb.mxu1 %v851_v0  ;;  %v909_v56 = vld [vmem:[%s3179_s5 + $0x210] sm:$0xff]  ;;  %v910_v62 = vld [vmem:[%s3179_s5 + $0x218] sm:$0xff] }
 0x1ef   : > { %1170 = vmatpush.msra.mxu3 %v1052_v63  ;;  %1126 = vmatpush.msra.mxu0 %v1051_v61  ;;  %v1037_v63 = vld [vmem:[%s3179_s5 + $0x610] sm:$0xff]  ;;  %v1038_v0 = vld [vmem:[%s3179_s5 + $0x618] sm:$0xff] }
 0x1f0   : > { %1149 = vmatpush.msrb.mxu2 %v916_v49  ;;  %1114 = vmatpush.msrb.mxu1 %v843_v1  ;;  %v901_v61 = vld [vmem:[%s3179_s5 + $0x1d0] sm:$0xff]  ;;  %v902_v49 = vld [vmem:[%s3179_s5 + $0x1d8] sm:$0xff] }
 0x1f1   : > { %1171 = vmatpush.msra.mxu3 %v1044_v58  ;;  %1127 = vmatpush.msra.mxu0 %v1043_v2  ;;  %v1029_v58 = vld [vmem:[%s3179_s5 + $0x5d0] sm:$0xff]  ;;  %v1030_v1 = vld [vmem:[%s3179_s5 + $0x5d8] sm:$0xff] }
 0x1f2   : > { %1150 = vmatpush.msrb.mxu2 %v908_v3  ;;  %1187 = vmatpush.msra.mxu1 %v965_v51  ;;  %v893_v2 = vld [vmem:[%s3179_s5 + $0x190] sm:$0xff]  ;;  %v894_v3 = vld [vmem:[%s3179_s5 + $0x198] sm:$0xff] }
 0x1f3   : > { %1172 = vmatpush.msra.mxu3 %v1036_v4  ;;  %1128 = vmatpush.msra.mxu0 %v1035_v5  ;;  %v1021_v4 = vld [vmem:[%s3179_s5 + $0x590] sm:$0xff]  ;;  %v1022_v51 = vld [vmem:[%s3179_s5 + $0x598] sm:$0xff] }
 0x1f4   : > { %1151 = vmatpush.msrb.mxu2 %v900_v6  ;;  %1188 = vmatpush.msra.mxu1 %v957_v53  ;;  %v885_v5 = vld [vmem:[%s3179_s5 + $0x150] sm:$0xff]  ;;  %v886_v6 = vld [vmem:[%s3179_s5 + $0x158] sm:$0xff] }
 0x1f5   : > { %1173 = vmatpush.msra.mxu3 %v1028_v7  ;;  %1129 = vmatpush.msra.mxu0 %v1027_v8  ;;  %v1013_v7 = vld [vmem:[%s3179_s5 + $0x550] sm:$0xff]  ;;  %v1014_v53 = vld [vmem:[%s3179_s5 + $0x558] sm:$0xff] }
 0x1f6   : > { %1152 = vmatpush.msrb.mxu2 %v892_v9  ;;  %1189 = vmatpush.msra.mxu1 %v949_v12  ;;  %v877_v8 = vld [vmem:[%s3179_s5 + $0x110] sm:$0xff]  ;;  %v878_v9 = vld [vmem:[%s3179_s5 + $0x118] sm:$0xff] }
 0x1f7   : > { %1174 = vmatpush.msra.mxu3 %v1020_v10  ;;  %1130 = vmatpush.msra.mxu0 %v1019_v13  ;;  %v1005_v10 = vld [vmem:[%s3179_s5 + $0x510] sm:$0xff]  ;;  %v1006_v12 = vld [vmem:[%s3179_s5 + $0x518] sm:$0xff] }
 0x1f8   : > { %1153 = vmatpush.msrb.mxu2 %v884_v60  ;;  %1190 = vmatpush.msra.mxu1 %v941_v15  ;;  %v869_v13 = vld [vmem:[%s3179_s5 + $0xd0] sm:$0xff]  ;;  %v870_v60 = vld [vmem:[%s3179_s5 + $0xd8] sm:$0xff] }
 0x1f9   : > { %1175 = vmatpush.msra.mxu3 %v1012_v14  ;;  %1131 = vmatpush.msra.mxu0 %v1011_v16  ;;  %v997_v14 = vld [vmem:[%s3179_s5 + $0x4d0] sm:$0xff]  ;;  %v998_v15 = vld [vmem:[%s3179_s5 + $0x4d8] sm:$0xff] }
 0x1fa   : > { %1154 = vmatpush.msrb.mxu2 %v876_v17  ;;  %1191 = vmatpush.msra.mxu1 %v933_v19  ;;  %v861_v16 = vld [vmem:[%s3179_s5 + $0x90] sm:$0xff]  ;;  %v862_v17 = vld [vmem:[%s3179_s5 + $0x98] sm:$0xff] }
 0x1fb   : > { %1176 = vmatpush.msra.mxu3 %v1004_v18  ;;  %1132 = vmatpush.msra.mxu0 %v1003_v54  ;;  %v989_v18 = vld [vmem:[%s3179_s5 + $0x490] sm:$0xff]  ;;  %v990_v19 = vld [vmem:[%s3179_s5 + $0x498] sm:$0xff] }
 0x1fc   : > { %1155 = vmatpush.msrb.mxu2 %v868_v55  ;;  %1192 = vmatpush.msra.mxu1 %v925_v42  ;;  %v853_v54 = vld [vmem:[%s3179_s5 + $0x50] sm:$0xff]  ;;  %v854_v55 = vld [vmem:[%s3179_s5 + $0x58] sm:$0xff] }
 0x1fd   : > { %1177 = vmatpush.msra.mxu3 %v996_v20  ;;  %1133 = vmatpush.msra.mxu0 %v995_v21  ;;  %v981_v20 = vld [vmem:[%s3179_s5 + $0x450] sm:$0xff]  ;;  %v982_v21 = vld [vmem:[%s3179_s5 + $0x458] sm:$0xff] }
 0x1fe   : > { %1156 = vmatpush.msrb.mxu2 %v860_v22  ;;  %1193 = vmatpush.msra.mxu1 %v917_v46  ;;  %v845_v22 = vld [vmem:[%s3179_s5 + $0x10] sm:$0xff] }
 0x1ff   : > { %1178 = vmatpush.msra.mxu3 %v988_v23  ;;  %1134 = vmatpush.msra.mxu0 %v987_v24  ;;  %v846_v23 = vld [vmem:[%s3179_s5 + $0x18] sm:$0xff]  ;;  %v973_v24 = vld [vmem:[%s3179_s5 + $0x410] sm:$0xff] }
 0x200   : > { %1157 = vmatpush.msrb.mxu2 %v852_v25  ;;  %1194 = vmatpush.msra.mxu1 %v909_v56  ;;  %v974_v25 = vld [vmem:[%s3179_s5 + $0x418] sm:$0xff] }
 0x201   : > { %1179 = vmatpush.msra.mxu3 %v980_v26  ;;  %1135 = vmatpush.msra.mxu0 %v979_v57 }
 0x202   : > { %1158 = vmatpush.msrb.mxu2 %v844_v59  ;;  %1195 = vmatpush.msra.mxu1 %v901_v61  ;;  %v943_v61 = vld [vmem:[%s3179_s5 + $0x320] sm:$0xff] }
 0x203   : > { %1180 = vmatpush.msra.mxu3 %v972_v28  ;;  %1136 = vmatpush.msra.mxu0 %v971_v31  ;;  %v733_v28 = vpop.permute.xlu0 %732 }
 0x204   : > { %1231 = vmatpush.msra.mxu2 %v966_v29  ;;  %1196 = vmatpush.msra.mxu1 %v893_v2  ;;  %v1072_v2 = vld [vmem:[%s3179_s5 + $0x728] sm:$0xff] }
 0x205   : > { %1253 = vmatpush.msrb.mxu3 %v1094_v33  ;;  %1209 = vmatpush.msrb.mxu0 %v1093_v34 }
 0x206   : > { %1232 = vmatpush.msra.mxu2 %v958_v37  ;;  %1197 = vmatpush.msra.mxu1 %v885_v5  ;;  %v1063_v5 = vld [vmem:[%s3179_s5 + $0x6e0] sm:$0xff] }
 0x207   : > { %1254 = vmatpush.msrb.mxu3 %v1086_v38  ;;  %1210 = vmatpush.msrb.mxu0 %v1085_v11 }
 0x208   : > { %1233 = vmatpush.msra.mxu2 %v950_v30  ;;  %1198 = vmatpush.msra.mxu1 %v877_v8  ;;  %v967_v30 = vld [vmem:[%s3179_s5 + $0x3e0] sm:$0xff] }
 0x209   : > { %1255 = vmatpush.msrb.mxu3 %v1078_v27  ;;  %1211 = vmatpush.msrb.mxu0 %v1077_v32  ;;  %v968_v27 = vld [vmem:[%s3179_s5 + $0x3e8] sm:$0xff]  ;;  %v1055_v8 = vld [vmem:[%s3179_s5 + $0x6a0] sm:$0xff] }
 0x20a   : > { %1234 = vmatpush.msra.mxu2 %v942_v50  ;;  %1199 = vmatpush.msra.mxu1 %v869_v13  ;;  %v1047_v13 = vld [vmem:[%s3179_s5 + $0x660] sm:$0xff] }
 0x20b   : > { %1256 = vmatpush.msrb.mxu3 %v1070_v35  ;;  %1212 = vmatpush.msrb.mxu0 %v1069_v36  ;;  %v1095_v35 = vld [vmem:[%s3179_s5 + $0x7e0] sm:$0xff]  ;;  %v1096_v36 = vld [vmem:[%s3179_s5 + $0x7e8] sm:$0xff] }
 0x20c   : > { %1235 = vmatpush.msra.mxu2 %v934_v39  ;;  %1200 = vmatpush.msra.mxu1 %v861_v16  ;;  %v1039_v16 = vld [vmem:[%s3179_s5 + $0x620] sm:$0xff] }
 0x20d   : > { %1213 = vmatpush.msrb.mxu0 %v1061_v40  ;;  %1257 = vmatpush.msrb.mxu3 %v1062_v41  ;;  %v959_v40 = vld [vmem:[%s3179_s5 + $0x3a0] sm:$0xff]  ;;  %v960_v41 = vld [vmem:[%s3179_s5 + $0x3a8] sm:$0xff] }
 0x20e   : > { %1236 = vmatpush.msra.mxu2 %v926_v43  ;;  %1201 = vmatpush.msra.mxu1 %v853_v54  ;;  %v1031_v54 = vld [vmem:[%s3179_s5 + $0x5e0] sm:$0xff] }
 0x20f   : > { %1214 = vmatpush.msrb.mxu0 %v1053_v44  ;;  %1258 = vmatpush.msrb.mxu3 %v1054_v45  ;;  %v1087_v44 = vld [vmem:[%s3179_s5 + $0x7a0] sm:$0xff]  ;;  %v1088_v45 = vld [vmem:[%s3179_s5 + $0x7a8] sm:$0xff] }
 0x210   : > { %1237 = vmatpush.msra.mxu2 %v918_v47  ;;  %1202 = vmatpush.msra.mxu1 %v845_v22  ;;  %v1023_v22 = vld [vmem:[%s3179_s5 + $0x5a0] sm:$0xff] }
 0x211   : > { %1215 = vmatpush.msrb.mxu0 %v1045_v48  ;;  %1259 = vmatpush.msrb.mxu3 %v1046_v52  ;;  %v951_v48 = vld [vmem:[%s3179_s5 + $0x360] sm:$0xff]  ;;  %v952_v52 = vld [vmem:[%s3179_s5 + $0x368] sm:$0xff] }
 0x212   : > { %1238 = vmatpush.msra.mxu2 %v910_v62  ;;  %v1079_v62 = vld [vmem:[%s3179_s5 + $0x760] sm:$0xff] }
 0x213   : > { %1216 = vmatpush.msrb.mxu0 %v1037_v63  ;;  %1260 = vmatpush.msrb.mxu3 %v1038_v0  ;;  %v1080_v63 = vld [vmem:[%s3179_s5 + $0x768] sm:$0xff] }
 0x214   : > { %1239 = vmatpush.msra.mxu2 %v902_v49  ;;  %v944_v49 = vld [vmem:[%s3179_s5 + $0x328] sm:$0xff] }
 0x215   : > { %1217 = vmatpush.msrb.mxu0 %v1029_v58  ;;  %1261 = vmatpush.msrb.mxu3 %v1030_v1  ;;  %v1071_v1 = vld [vmem:[%s3179_s5 + $0x720] sm:$0xff] }
 0x216   : > { %1240 = vmatpush.msra.mxu2 %v894_v3 }
 0x217   : > { %1218 = vmatpush.msrb.mxu0 %v1021_v4  ;;  %1262 = vmatpush.msrb.mxu3 %v1022_v51  ;;  %v935_v4 = vld [vmem:[%s3179_s5 + $0x2e0] sm:$0xff]  ;;  %v936_v51 = vld [vmem:[%s3179_s5 + $0x2e8] sm:$0xff] }
 0x218   : > { %1241 = vmatpush.msra.mxu2 %v886_v6  ;;  %v1064_v6 = vld [vmem:[%s3179_s5 + $0x6e8] sm:$0xff] }
 0x219   : > { %1219 = vmatpush.msrb.mxu0 %v1013_v7  ;;  %1263 = vmatpush.msrb.mxu3 %v1014_v53  ;;  %v927_v7 = vld [vmem:[%s3179_s5 + $0x2a0] sm:$0xff]  ;;  %v928_v53 = vld [vmem:[%s3179_s5 + $0x2a8] sm:$0xff] }
 0x21a   : > { %1242 = vmatpush.msra.mxu2 %v878_v9  ;;  %v1056_v9 = vld [vmem:[%s3179_s5 + $0x6a8] sm:$0xff] }
 0x21b   : > { %1220 = vmatpush.msrb.mxu0 %v1005_v10  ;;  %1264 = vmatpush.msrb.mxu3 %v1006_v12  ;;  %v919_v10 = vld [vmem:[%s3179_s5 + $0x260] sm:$0xff]  ;;  %v920_v12 = vld [vmem:[%s3179_s5 + $0x268] sm:$0xff] }
 0x21c   : > { %1243 = vmatpush.msra.mxu2 %v870_v60  ;;  %v1048_v60 = vld [vmem:[%s3179_s5 + $0x668] sm:$0xff] }
 0x21d   : > { %1221 = vmatpush.msrb.mxu0 %v997_v14  ;;  %1265 = vmatpush.msrb.mxu3 %v998_v15  ;;  %v911_v14 = vld [vmem:[%s3179_s5 + $0x220] sm:$0xff]  ;;  %v912_v15 = vld [vmem:[%s3179_s5 + $0x228] sm:$0xff] }
 0x21e   : > { %1244 = vmatpush.msra.mxu2 %v862_v17  ;;  %v1040_v17 = vld [vmem:[%s3179_s5 + $0x628] sm:$0xff] }
 0x21f   : > { %1222 = vmatpush.msrb.mxu0 %v989_v18  ;;  %1266 = vmatpush.msrb.mxu3 %v990_v19  ;;  %v903_v18 = vld [vmem:[%s3179_s5 + $0x1e0] sm:$0xff]  ;;  %v904_v19 = vld [vmem:[%s3179_s5 + $0x1e8] sm:$0xff] }
 0x220   : > { %1245 = vmatpush.msra.mxu2 %v854_v55  ;;  %v1032_v55 = vld [vmem:[%s3179_s5 + $0x5e8] sm:$0xff] }
 0x221   : > { %1223 = vmatpush.msrb.mxu0 %v981_v20  ;;  %1267 = vmatpush.msrb.mxu3 %v982_v21  ;;  %v895_v20 = vld [vmem:[%s3179_s5 + $0x1a0] sm:$0xff]  ;;  %v896_v21 = vld [vmem:[%s3179_s5 + $0x1a8] sm:$0xff] }
 0x222   : > { %1246 = vmatpush.msra.mxu2 %v846_v23  ;;  %v1024_v23 = vld [vmem:[%s3179_s5 + $0x5a8] sm:$0xff] }
 0x223   : > { %1224 = vmatpush.msrb.mxu0 %v973_v24  ;;  %1268 = vmatpush.msrb.mxu3 %v974_v25  ;;  %v887_v24 = vld [vmem:[%s3179_s5 + $0x160] sm:$0xff]  ;;  %v888_v25 = vld [vmem:[%s3179_s5 + $0x168] sm:$0xff] }
 0x23c   : > { %v738_v50 = vpop.permute.xlu1 %737 }
 0x245   : > { %v787_v26 = vpop.f32.mrf.mxu3 }
 0x24d   : > { %v790_v57 = vpop.f32.mrf.mxu3 }
 0x260   : > { %v833_v59 = vpop.f32.mrf.mxu0 }
 0x263   : > { %v764_v29 = vpop.f32.mrf.mxu2 }
 0x264   : > { %v765_v31 = vadd.f32 %v764_v29, %v733_v28  ;;  %v1007_v29 = vld [vmem:[%s3179_s5 + $0x520] sm:$0xff] }
 0x265   : > { %v810_v33 = vpop.f32.mrf.mxu3 }
 0x266   : > { %v811_v34 = vadd.f32 %v810_v33, %v733_v28  ;;  %v788_v37 = vadd.f32 %v787_v26, %v765_v31  ;;  %v1015_v26 = vld [vmem:[%s3179_s5 + $0x560] sm:$0xff]  ;;  %v880_v28 = vld [vmem:[%s3179_s5 + $0x128] sm:$0xff] }
 0x267   : > { %v1008_v31 = vld [vmem:[%s3179_s5 + $0x528] sm:$0xff]  ;;  %v871_v33 = vld [vmem:[%s3179_s5 + $0xe0] sm:$0xff] }
 0x268   : > { %v834_v38 = vadd.f32 %v833_v59, %v811_v34  ;;  %v2651_v11 = vmax.f32 %v788_v37, 0.0  ;;  %v836_v46 = vpop.f32.mrf.mxu0  ;;  %v879_v59 = vld [vmem:[%s3179_s5 + $0x120] sm:$0xff]  ;;  %v872_v34 = vld [vmem:[%s3179_s5 + $0xe8] sm:$0xff] }
 0x269   : > { %v999_v37 = vld [vmem:[%s3179_s5 + $0x4e0] sm:$0xff] }
 0x26a   : > { %v2659_v32 = vmax.f32 %v834_v38, 0.0  ;;  %1115 = vmatmul.f32.vlgmr.msrb.gmra.mxu1 %v2651_v11  ;;  %1159 = vmatmul.f32.vlgmr.msrb.gmra.mxu2 %v2651_v11  ;;  %v1000_v38 = vld [vmem:[%s3179_s5 + $0x4e8] sm:$0xff] }
 0x26b   : > { %1275 = vmatpush.msrb.mxu1 %v967_v30  ;;  %1319 = vmatpush.msrb.mxu2 %v968_v27  ;;  %v767_v39 = vpop.f32.mrf.mxu2  ;;  %v863_v30 = vld [vmem:[%s3179_s5 + $0xa0] sm:$0xff]  ;;  %v864_v27 = vld [vmem:[%s3179_s5 + $0xa8] sm:$0xff] }
 0x26c   : > { %v768_v42 = vadd.f32 %v767_v39, %v738_v50  ;;  %1137 = vmatmul.f32.vlgmr.msra.gmra.mxu0 %v2659_v32  ;;  %1181 = vmatmul.f32.vlgmr.msra.gmra.mxu3 %v2659_v32  ;;  %v856_v39 = vld [vmem:[%s3179_s5 + $0x68] sm:$0xff] }
 0x26d   : > { %v813_v43 = vpop.f32.mrf.mxu3  ;;  %1297 = vmatpush.msra.mxu0 %v1095_v35  ;;  %1341 = vmatpush.msra.mxu3 %v1096_v36  ;;  %v992_v35 = vld [vmem:[%s3179_s5 + $0x4a8] sm:$0xff]  ;;  %v855_v36 = vld [vmem:[%s3179_s5 + $0x60] sm:$0xff] }
 0x26e   : > { %v814_v47 = vadd.f32 %v813_v43, %v738_v50  ;;  %v791_v56 = vadd.f32 %v790_v57, %v768_v42  ;;  %1276 = vmatpush.msrb.mxu1 %v959_v40  ;;  %1320 = vmatpush.msrb.mxu2 %v960_v41  ;;  %v1016_v57 = vld [vmem:[%s3179_s5 + $0x568] sm:$0xff]  ;;  %v991_v50 = vld [vmem:[%s3179_s5 + $0x4a0] sm:$0xff] }
 0x26f   : > { %1298 = vmatpush.msra.mxu0 %v1087_v44  ;;  %1342 = vmatpush.msra.mxu3 %v1088_v45  ;;  %v983_v40 = vld [vmem:[%s3179_s5 + $0x460] sm:$0xff]  ;;  %v984_v41 = vld [vmem:[%s3179_s5 + $0x468] sm:$0xff] }
 0x270   : > { %v837_v0 = vadd.f32 %v836_v46, %v814_v47  ;;  %v2701_v58 = vmax.f32 %v791_v56, 0.0  ;;  %1277 = vmatpush.msrb.mxu1 %v951_v48  ;;  %1321 = vmatpush.msrb.mxu2 %v952_v52  ;;  %v847_v42 = vld [vmem:[%s3179_s5 + $0x20] sm:$0xff]  ;;  %v848_v43 = vld [vmem:[%s3179_s5 + $0x28] sm:$0xff]  ;;  %v969_v46 = vld [vmem:[%s3179_s5 + $0x3f0] sm:$0xff] }
 0x271   : > { %1299 = vmatpush.msra.mxu0 %v1079_v62  ;;  %1343 = vmatpush.msra.mxu3 %v1080_v63  ;;  %v975_v44 = vld [vmem:[%s3179_s5 + $0x420] sm:$0xff]  ;;  %v976_v45 = vld [vmem:[%s3179_s5 + $0x428] sm:$0xff]  ;;  %v970_v47 = vld [vmem:[%s3179_s5 + $0x3f8] sm:$0xff] }
 0x272   : > { %v2709_v3 = vmax.f32 %v837_v0, 0.0  ;;  %1278 = vmatpush.msrb.mxu1 %v943_v61  ;;  %1322 = vmatpush.msrb.mxu2 %v944_v49  ;;  %v1097_v48 = vld [vmem:[%s3179_s5 + $0x7f0] sm:$0xff]  ;;  %v1098_v52 = vld [vmem:[%s3179_s5 + $0x7f8] sm:$0xff] }
 0x273   : > { %1300 = vmatpush.msra.mxu0 %v1071_v1  ;;  %1344 = vmatpush.msra.mxu3 %v1072_v2  ;;  %v961_v56 = vld [vmem:[%s3179_s5 + $0x3b0] sm:$0xff]  ;;  %v962_v62 = vld [vmem:[%s3179_s5 + $0x3b8] sm:$0xff] }
 0x274   : > { %1118 = vmatmul.f32.gmra.mxu1 %v2701_v58  ;;  %1162 = vmatmul.f32.gmra.mxu2 %v2701_v58  ;;  %v1089_v63 = vld [vmem:[%s3179_s5 + $0x7b0] sm:$0xff]  ;;  %v1090_v0 = vld [vmem:[%s3179_s5 + $0x7b8] sm:$0xff] }
 0x275   : > { %1279 = vmatpush.msrb.mxu1 %v935_v4  ;;  %1323 = vmatpush.msrb.mxu2 %v936_v51  ;;  %v953_v61 = vld [vmem:[%s3179_s5 + $0x370] sm:$0xff]  ;;  %v954_v49 = vld [vmem:[%s3179_s5 + $0x378] sm:$0xff] }
 0x276   : > { %1140 = vmatmul.f32.gmra.mxu0 %v2709_v3  ;;  %1184 = vmatmul.f32.gmra.mxu3 %v2709_v3  ;;  %v1081_v1 = vld [vmem:[%s3179_s5 + $0x770] sm:$0xff]  ;;  %v1082_v2 = vld [vmem:[%s3179_s5 + $0x778] sm:$0xff] }
 0x277   : > { %1301 = vmatpush.msra.mxu0 %v1063_v5  ;;  %1345 = vmatpush.msra.mxu3 %v1064_v6  ;;  %v945_v4 = vld [vmem:[%s3179_s5 + $0x330] sm:$0xff]  ;;  %v946_v51 = vld [vmem:[%s3179_s5 + $0x338] sm:$0xff] }
 0x278   : > { %1280 = vmatpush.msrb.mxu1 %v927_v7  ;;  %1324 = vmatpush.msrb.mxu2 %v928_v53  ;;  %v1073_v5 = vld [vmem:[%s3179_s5 + $0x730] sm:$0xff]  ;;  %v1074_v6 = vld [vmem:[%s3179_s5 + $0x738] sm:$0xff] }
 0x279   : > { %1302 = vmatpush.msra.mxu0 %v1055_v8  ;;  %1346 = vmatpush.msra.mxu3 %v1056_v9  ;;  %v937_v7 = vld [vmem:[%s3179_s5 + $0x2f0] sm:$0xff]  ;;  %v938_v53 = vld [vmem:[%s3179_s5 + $0x2f8] sm:$0xff] }
 0x27a   : > { %1281 = vmatpush.msrb.mxu1 %v919_v10  ;;  %1325 = vmatpush.msrb.mxu2 %v920_v12  ;;  %v1065_v8 = vld [vmem:[%s3179_s5 + $0x6f0] sm:$0xff]  ;;  %v1066_v9 = vld [vmem:[%s3179_s5 + $0x6f8] sm:$0xff] }
 0x27b   : > { %1303 = vmatpush.msra.mxu0 %v1047_v13  ;;  %1347 = vmatpush.msra.mxu3 %v1048_v60  ;;  %v929_v10 = vld [vmem:[%s3179_s5 + $0x2b0] sm:$0xff]  ;;  %v930_v12 = vld [vmem:[%s3179_s5 + $0x2b8] sm:$0xff] }
 0x27c   : > { %1282 = vmatpush.msrb.mxu1 %v911_v14  ;;  %1326 = vmatpush.msrb.mxu2 %v912_v15  ;;  %v1057_v13 = vld [vmem:[%s3179_s5 + $0x6b0] sm:$0xff]  ;;  %v1058_v60 = vld [vmem:[%s3179_s5 + $0x6b8] sm:$0xff] }
 0x27d   : > { %1304 = vmatpush.msra.mxu0 %v1039_v16  ;;  %1348 = vmatpush.msra.mxu3 %v1040_v17  ;;  %v921_v14 = vld [vmem:[%s3179_s5 + $0x270] sm:$0xff]  ;;  %v922_v15 = vld [vmem:[%s3179_s5 + $0x278] sm:$0xff] }
 0x27e   : > { %1203 = vmatmul.f32.vlgmr.msra.gmra.mxu1 %v2651_v11  ;;  %1247 = vmatmul.f32.vlgmr.msra.gmra.mxu2 %v2651_v11  ;;  %v1049_v16 = vld [vmem:[%s3179_s5 + $0x670] sm:$0xff]  ;;  %v1050_v17 = vld [vmem:[%s3179_s5 + $0x678] sm:$0xff] }
 0x27f   : > { %1283 = vmatpush.msrb.mxu1 %v903_v18  ;;  %1327 = vmatpush.msrb.mxu2 %v904_v19  ;;  %v913_v18 = vld [vmem:[%s3179_s5 + $0x230] sm:$0xff]  ;;  %v914_v19 = vld [vmem:[%s3179_s5 + $0x238] sm:$0xff] }
 0x280   : > { %1225 = vmatmul.f32.vlgmr.msrb.gmra.mxu0 %v2659_v32  ;;  %1269 = vmatmul.f32.vlgmr.msrb.gmra.mxu3 %v2659_v32 }
 0x281   : > { %1305 = vmatpush.msra.mxu0 %v1031_v54  ;;  %1349 = vmatpush.msra.mxu3 %v1032_v55  ;;  %v1041_v54 = vld [vmem:[%s3179_s5 + $0x630] sm:$0xff]  ;;  %v1042_v55 = vld [vmem:[%s3179_s5 + $0x638] sm:$0xff] }
 0x282   : > { %1284 = vmatpush.msrb.mxu1 %v895_v20  ;;  %1328 = vmatpush.msrb.mxu2 %v896_v21  ;;  %v905_v20 = vld [vmem:[%s3179_s5 + $0x1f0] sm:$0xff]  ;;  %v906_v21 = vld [vmem:[%s3179_s5 + $0x1f8] sm:$0xff] }
 0x283   : > { %1306 = vmatpush.msra.mxu0 %v1023_v22  ;;  %1350 = vmatpush.msra.mxu3 %v1024_v23  ;;  %v1033_v22 = vld [vmem:[%s3179_s5 + $0x5f0] sm:$0xff]  ;;  %v1034_v23 = vld [vmem:[%s3179_s5 + $0x5f8] sm:$0xff] }
 0x284   : > { %1285 = vmatpush.msrb.mxu1 %v887_v24  ;;  %1329 = vmatpush.msrb.mxu2 %v888_v25  ;;  %v897_v24 = vld [vmem:[%s3179_s5 + $0x1b0] sm:$0xff]  ;;  %v898_v25 = vld [vmem:[%s3179_s5 + $0x1b8] sm:$0xff] }
 0x285   : > { %1307 = vmatpush.msra.mxu0 %v1015_v26  ;;  %1351 = vmatpush.msra.mxu3 %v1016_v57  ;;  %v1025_v26 = vld [vmem:[%s3179_s5 + $0x5b0] sm:$0xff]  ;;  %v1026_v57 = vld [vmem:[%s3179_s5 + $0x5b8] sm:$0xff] }
 0x286   : > { %1286 = vmatpush.msrb.mxu1 %v879_v59  ;;  %1330 = vmatpush.msrb.mxu2 %v880_v28  ;;  %v889_v59 = vld [vmem:[%s3179_s5 + $0x170] sm:$0xff]  ;;  %v890_v28 = vld [vmem:[%s3179_s5 + $0x178] sm:$0xff] }
 0x287   : > { %1308 = vmatpush.msra.mxu0 %v1007_v29  ;;  %1352 = vmatpush.msra.mxu3 %v1008_v31  ;;  %v1017_v29 = vld [vmem:[%s3179_s5 + $0x570] sm:$0xff]  ;;  %v1018_v31 = vld [vmem:[%s3179_s5 + $0x578] sm:$0xff] }
 0x288   : > { %1206 = vmatmul.f32.gmra.mxu1 %v2701_v58  ;;  %1250 = vmatmul.f32.gmra.mxu2 %v2701_v58 }
 0x289   : > { %1287 = vmatpush.msrb.mxu1 %v871_v33  ;;  %1331 = vmatpush.msrb.mxu2 %v872_v34  ;;  %v881_v33 = vld [vmem:[%s3179_s5 + $0x130] sm:$0xff]  ;;  %v882_v34 = vld [vmem:[%s3179_s5 + $0x138] sm:$0xff] }
 0x28a   : > { %1228 = vmatmul.f32.gmra.mxu0 %v2709_v3  ;;  %1272 = vmatmul.f32.gmra.mxu3 %v2709_v3 }
 0x28b   : > { %1309 = vmatpush.msra.mxu0 %v999_v37  ;;  %1353 = vmatpush.msra.mxu3 %v1000_v38  ;;  %v1009_v37 = vld [vmem:[%s3179_s5 + $0x530] sm:$0xff]  ;;  %v1010_v38 = vld [vmem:[%s3179_s5 + $0x538] sm:$0xff] }
 0x28c   : > { %1288 = vmatpush.msrb.mxu1 %v863_v30  ;;  %1332 = vmatpush.msrb.mxu2 %v864_v27  ;;  %v873_v30 = vld [vmem:[%s3179_s5 + $0xf0] sm:$0xff]  ;;  %v874_v27 = vld [vmem:[%s3179_s5 + $0xf8] sm:$0xff] }
 0x28d   : > { %1310 = vmatpush.msra.mxu0 %v991_v50  ;;  %1354 = vmatpush.msra.mxu3 %v992_v35  ;;  %v1001_v50 = vld [vmem:[%s3179_s5 + $0x4f0] sm:$0xff]  ;;  %v1002_v35 = vld [vmem:[%s3179_s5 + $0x4f8] sm:$0xff] }
 0x28e   : > { %1289 = vmatpush.msrb.mxu1 %v855_v36  ;;  %1333 = vmatpush.msrb.mxu2 %v856_v39  ;;  %v865_v36 = vld [vmem:[%s3179_s5 + $0xb0] sm:$0xff]  ;;  %v866_v39 = vld [vmem:[%s3179_s5 + $0xb8] sm:$0xff] }
 0x28f   : > { %1311 = vmatpush.msra.mxu0 %v983_v40  ;;  %1355 = vmatpush.msra.mxu3 %v984_v41  ;;  %v993_v40 = vld [vmem:[%s3179_s5 + $0x4b0] sm:$0xff]  ;;  %v994_v41 = vld [vmem:[%s3179_s5 + $0x4b8] sm:$0xff] }
 0x290   : > { %1290 = vmatpush.msrb.mxu1 %v847_v42  ;;  %1334 = vmatpush.msrb.mxu2 %v848_v43  ;;  %v857_v42 = vld [vmem:[%s3179_s5 + $0x70] sm:$0xff]  ;;  %v858_v43 = vld [vmem:[%s3179_s5 + $0x78] sm:$0xff] }
 0x291   : > { %1312 = vmatpush.msra.mxu0 %v975_v44  ;;  %1356 = vmatpush.msra.mxu3 %v976_v45  ;;  %v985_v44 = vld [vmem:[%s3179_s5 + $0x470] sm:$0xff]  ;;  %v986_v45 = vld [vmem:[%s3179_s5 + $0x478] sm:$0xff] }
 0x292   : > { %1363 = vmatpush.msra.mxu1 %v969_v46  ;;  %1407 = vmatpush.msra.mxu2 %v970_v47  ;;  %v849_v46 = vld [vmem:[%s3179_s5 + $0x30] sm:$0xff]  ;;  %v850_v47 = vld [vmem:[%s3179_s5 + $0x38] sm:$0xff] }
 0x293   : > { %1291 = vmatmul.f32.vlgmr.msrb.gmra.mxu1 %v2651_v11  ;;  %1335 = vmatmul.f32.vlgmr.msrb.gmra.mxu2 %v2651_v11 }
 0x294   : > { %1385 = vmatpush.msrb.mxu0 %v1097_v48  ;;  %1429 = vmatpush.msrb.mxu3 %v1098_v52  ;;  %v977_v48 = vld [vmem:[%s3179_s5 + $0x430] sm:$0xff]  ;;  %v978_v52 = vld [vmem:[%s3179_s5 + $0x438] sm:$0xff] }
 0x295   : > { %1313 = vmatmul.f32.vlgmr.msra.gmra.mxu0 %v2659_v32  ;;  %1357 = vmatmul.f32.vlgmr.msra.gmra.mxu3 %v2659_v32 }
 0x296   : > { %1364 = vmatpush.msra.mxu1 %v961_v56  ;;  %1408 = vmatpush.msra.mxu2 %v962_v62 }
 0x297   : > { %1386 = vmatpush.msrb.mxu0 %v1089_v63  ;;  %1430 = vmatpush.msrb.mxu3 %v1090_v0 }
 0x298   : > { %1365 = vmatpush.msra.mxu1 %v953_v61  ;;  %1409 = vmatpush.msra.mxu2 %v954_v49 }
 0x299   : > { %1387 = vmatpush.msrb.mxu0 %v1081_v1  ;;  %1431 = vmatpush.msrb.mxu3 %v1082_v2 }
 0x29a   : > { %1366 = vmatpush.msra.mxu1 %v945_v4  ;;  %1410 = vmatpush.msra.mxu2 %v946_v51 }
 0x29b   : > { %1388 = vmatpush.msrb.mxu0 %v1073_v5  ;;  %1432 = vmatpush.msrb.mxu3 %v1074_v6 }
 0x29c   : > { %1367 = vmatpush.msra.mxu1 %v937_v7  ;;  %1411 = vmatpush.msra.mxu2 %v938_v53 }
 0x29d   : > { %1293 = vmatmul.f32.gmra.mxu1 %v2701_v58  ;;  %1337 = vmatmul.f32.gmra.mxu2 %v2701_v58 }
 0x29e   : > { %1389 = vmatpush.msrb.mxu0 %v1065_v8  ;;  %1433 = vmatpush.msrb.mxu3 %v1066_v9 }
 0x29f   : > { %1315 = vmatmul.f32.gmra.mxu0 %v2709_v3  ;;  %1359 = vmatmul.f32.gmra.mxu3 %v2709_v3 }
 0x2a0   : > { %1368 = vmatpush.msra.mxu1 %v929_v10  ;;  %1412 = vmatpush.msra.mxu2 %v930_v12 }
 0x2a1   : > { %1390 = vmatpush.msrb.mxu0 %v1057_v13  ;;  %1434 = vmatpush.msrb.mxu3 %v1058_v60 }
 0x2a2   : > { %1369 = vmatpush.msra.mxu1 %v921_v14  ;;  %1413 = vmatpush.msra.mxu2 %v922_v15 }
 0x2a3   : > { %1391 = vmatpush.msrb.mxu0 %v1049_v16  ;;  %1435 = vmatpush.msrb.mxu3 %v1050_v17 }
 0x2a4   : > { %1370 = vmatpush.msra.mxu1 %v913_v18  ;;  %1414 = vmatpush.msra.mxu2 %v914_v19 }
 0x2a5   : > { %1392 = vmatpush.msrb.mxu0 %v1041_v54  ;;  %1436 = vmatpush.msrb.mxu3 %v1042_v55 }
 0x2a6   : > { %1371 = vmatpush.msra.mxu1 %v905_v20  ;;  %1415 = vmatpush.msra.mxu2 %v906_v21 }
 0x2a7   : > { %1393 = vmatpush.msrb.mxu0 %v1033_v22  ;;  %1437 = vmatpush.msrb.mxu3 %v1034_v23 }
 0x2a8   : > { %1372 = vmatpush.msra.mxu1 %v897_v24  ;;  %1416 = vmatpush.msra.mxu2 %v898_v25 }
 0x2a9   : > { %1394 = vmatpush.msrb.mxu0 %v1025_v26  ;;  %1438 = vmatpush.msrb.mxu3 %v1026_v57 }
 0x2aa   : > { %1373 = vmatpush.msra.mxu1 %v889_v59  ;;  %1417 = vmatpush.msra.mxu2 %v890_v28 }
 0x2ab   : > { %1395 = vmatpush.msrb.mxu0 %v1017_v29  ;;  %1439 = vmatpush.msrb.mxu3 %v1018_v31 }
 0x2ac   : > { %1374 = vmatpush.msra.mxu1 %v881_v33  ;;  %1418 = vmatpush.msra.mxu2 %v882_v34 }
 0x2ad   : > { %1396 = vmatpush.msrb.mxu0 %v1009_v37  ;;  %1440 = vmatpush.msrb.mxu3 %v1010_v38 }
 0x2ae   : > { %1375 = vmatpush.msra.mxu1 %v873_v30  ;;  %1419 = vmatpush.msra.mxu2 %v874_v27 }
 0x2af   : > { %1397 = vmatpush.msrb.mxu0 %v1001_v50  ;;  %1441 = vmatpush.msrb.mxu3 %v1002_v35 }
 0x2b0   : > { %1376 = vmatpush.msra.mxu1 %v865_v36  ;;  %1420 = vmatpush.msra.mxu2 %v866_v39 }
 0x2b1   : > { %1398 = vmatpush.msrb.mxu0 %v993_v40  ;;  %1442 = vmatpush.msrb.mxu3 %v994_v41  ;;  %v1556_v40 = vld [vmem:[%s3181_s7 + $0x38] sm:$0xff]  ;;  %v1555_v41 = vld [vmem:[%s3181_s7 + $0x30] sm:$0xff] }
 0x2b2   : > { %1377 = vmatpush.msra.mxu1 %v857_v42  ;;  %1421 = vmatpush.msra.mxu2 %v858_v43  ;;  %v1554_v42 = vld [vmem:[%s3181_s7 + $0x28] sm:$0xff]  ;;  %v1553_v43 = vld [vmem:[%s3181_s7 + $0x20] sm:$0xff] }
 0x2b3   : > { %1399 = vmatpush.msrb.mxu0 %v985_v44  ;;  %1443 = vmatpush.msrb.mxu3 %v986_v45  ;;  %v1552_v44 = vld [vmem:[%s3181_s7 + $0x18] sm:$0xff]  ;;  %v1551_v45 = vld [vmem:[%s3181_s7 + $0x10] sm:$0xff] }
 0x2b4   : > { %1378 = vmatpush.msra.mxu1 %v849_v46  ;;  %1422 = vmatpush.msra.mxu2 %v850_v47  ;;  %v1451_v46 = vld [vmem:[%s3180_s6] sm:$0x1] }
 0x2b5   : > { %1379 = vmatmul.f32.vlgmr.msra.gmra.mxu1 %v2651_v11  ;;  %1400 = vmatpush.msrb.mxu0 %v977_v48 }
 0x2b6   : > { %1423 = vmatmul.f32.vlgmr.msra.gmra.mxu2 %v2651_v11  ;;  %1444 = vmatpush.msrb.mxu3 %v978_v52 }
 0x2b7   : > { %1401 = vmatmul.f32.vlgmr.msrb.gmra.mxu0 %v2659_v32  ;;  %1445 = vmatmul.f32.vlgmr.msrb.gmra.mxu3 %v2659_v32 }
 0x2b8   : > { %1570 = vmatpush.msrb.mxu1 %v1556_v40 }
 0x2ba   : > { %1571 = vmatpush.msrb.mxu1 %v1555_v41 }
 0x2bc   : > { %1572 = vmatpush.msrb.mxu1 %v1554_v42 }
 0x2bd   : > { %1381 = vmatmul.f32.gmra.mxu1 %v2701_v58 }
 0x2be   : > { %1425 = vmatmul.f32.gmra.mxu2 %v2701_v58  ;;  %1573 = vmatpush.msrb.mxu1 %v1553_v43 }
 0x2bf   : > { %1403 = vmatmul.f32.gmra.mxu0 %v2709_v3  ;;  %1447 = vmatmul.f32.gmra.mxu3 %v2709_v3 }
 0x2c0   : > { %1574 = vmatpush.msrb.mxu1 %v1552_v44 }
 0x2c2   : > { %1575 = vmatpush.msrb.mxu1 %v1551_v45 }
 0x2e7   : > { %v1116_v56 = vpop.f32.mrf.mxu1 }
 0x2e9   : > { %v1138_v62 = vpop.f32.mrf.mxu0 }
 0x2ea   : > { %v3075_v63 = vadd.f32 %v1138_v62, %v1116_v56 }
 0x2ec   : > { %1454 = vst [vmem:[#allocation1] sm:$0xff] %v3075_v63  ;;  %v1452_v48 = vadd.f32 %v1451_v46, %v3075_v63  ;;  %v1586_v63 = vld [vmem:[%s3183_s9 + $0x18] sm:$0xff] }
 0x2ed   : > { %v1160_v11 = vpop.f32.mrf.mxu2 }
 0x2ef   : > { %v1182_v0 = vpop.f32.mrf.mxu3 }
 0x2f0   : > { %v1183_v49 = vadd.f32 %v1182_v0, %v1160_v11 }
 0x2f1   : > { %v1119_v61 = vpop.f32.mrf.mxu1 }
 0x2f3   : > { %v1456_v1 = vld [vmem:[#allocation1 + $0x1] ss:$9 sm:$0xff]  ;;  %v1141_v32 = vpop.f32.mrf.mxu0 }
 0x2f4   : > { %1462 = vst [vmem:[#allocation1] sm:$0xff] %v1183_v49  ;;  %1457 = vrot.lane.b32.xlu2 %v1456_v1, %s1897_s16  ;;  %v1550_v32 = vld [vmem:[%s3181_s7 + $0x8] sm:$0xff] }
 0x2f5   : > { %1576 = vmatpush.msrb.mxu1 %v1550_v32 }
 0x2f7   : > { %v1163_v58 = vpop.f32.mrf.mxu2 }
 0x2f8   : > { %v1549_v58 = vld [vmem:[%s3181_s7] sm:$0xff] }
 0x2f9   : > { %v1185_v2 = vpop.f32.mrf.mxu3  ;;  %1577 = vmatpush.msrb.mxu1 %v1549_v58 }
 0x2fb   : > { %v3079_v4 = vld [vmem:[#allocation1 + $0x2] ss:$9 sm:$0xff]  ;;  %v1204_v3 = vpop.f32.mrf.mxu1  ;;  %1604 = vmatpush.msra.mxu1 %v1586_v63 }
 0x2fc   : > { %1467 = vst [vmem:[#allocation1] sm:$0xff] %v1183_v49 }
 0x2fd   : > { %v1226_v51 = vpop.f32.mrf.mxu0 }
 0x2fe   : > { %v1227_v6 = vadd.f32 %v1226_v51, %v1204_v3 }
 0x301   : > { %v1248_v5 = vpop.f32.mrf.mxu2 }
 0x303   : > { %v1469_v7 = vld [vmem:[#allocation1 + $0x3] ss:$9 sm:$0xff]  ;;  %v1270_v53 = vpop.f32.mrf.mxu3 }
 0x304   : > { %1475 = vst [vmem:[#allocation1] sm:$0xff] %v1227_v6  ;;  %1470 = vrot.lane.b32.xlu0 %v1469_v7, %s1897_s16  ;;  %v1271_v14 = vadd.f32 %v1270_v53, %v1248_v5 }
 0x305   : > { %v1207_v8 = vpop.f32.mrf.mxu1 }
 0x307   : > { %v1229_v9 = vpop.f32.mrf.mxu0 }
 0x30b   : > { %v3082_v10 = vld [vmem:[#allocation1 + $0x4] ss:$9 sm:$0xff]  ;;  %v1251_v12 = vpop.f32.mrf.mxu2 }
 0x30c   : > { %1480 = vst [vmem:[#allocation1] sm:$0xff] %v1227_v6 }
 0x30d   : > { %v1273_v13 = vpop.f32.mrf.mxu3 }
 0x310   : > { %v1292_v60 = vpop.f32.mrf.mxu1 }
 0x312   : > { %v1314_v15 = vpop.f32.mrf.mxu0 }
 0x313   : > { %v1482_v16 = vld [vmem:[#allocation1 + $0x5] ss:$9 sm:$0xff] }
 0x314   : > { %1483 = vrot.lane.b32.xlu1 %v1482_v16, %s1897_s16  ;;  %1488 = vst [vmem:[#allocation1] sm:$0xff] %v1271_v14  ;;  %v1585_v15 = vld [vmem:[%s3183_s9 + $0x10] sm:$0xff]  ;;  %v1584_v16 = vld [vmem:[%s3183_s9 + $0x8] sm:$0xff] }
 0x315   : > { %1605 = vmatpush.msra.mxu1 %v1585_v15 }
 0x316   : > { %v1336_v17 = vpop.f32.mrf.mxu2 }
 0x317   : > { %v1583_v17 = vld [vmem:[%s3183_s9] sm:$0xff]  ;;  %1606 = vmatpush.msra.mxu1 %v1584_v16 }
 0x318   : > { %v1358_v18 = vpop.f32.mrf.mxu3 }
 0x319   : > { %1607 = vmatpush.msra.mxu1 %v1583_v17  ;;  %v1557_v18 = vld [vmem:[%s3182_s8] sm:$0x1] }
 0x31a   : > { %v1294_v54 = vpop.f32.mrf.mxu1 }
 0x31b   : > { %v1490_v19 = vld [vmem:[#allocation1 + $0x6] ss:$9 sm:$0xff] }
 0x31c   : > { %1493 = vst [vmem:[#allocation1] sm:$0xff] %v1271_v14  ;;  %v1316_v55 = vpop.f32.mrf.mxu0 }
 0x31d   : > { %v3085_v20 = vadd.f32 %v1316_v55, %v1294_v54 }
 0x320   : > { %v1338_v22 = vpop.f32.mrf.mxu2 }
 0x322   : > { %v1360_v23 = vpop.f32.mrf.mxu3 }
 0x323   : > { %v1495_v21 = vld [vmem:[#allocation1 + $0x7] ss:$9 sm:$0xff]  ;;  %v1361_v24 = vadd.f32 %v1360_v23, %v1338_v22 }
 0x324   : > { %1496 = vrot.lane.b32.xlu2 %v1495_v21, %s1897_s16  ;;  %1502 = vst [vmem:[#allocation1] sm:$0xff] %v3085_v20 }
 0x32b   : > { %v1504_v25 = vld [vmem:[#allocation1 + $0x1] ss:$9 sm:$0xff] }
 0x32c   : > { %1505 = vrot.lane.b32.xlu0 %v1504_v25, %s1897_s16  ;;  %1510 = vst [vmem:[#allocation1] sm:$0xff] %v1361_v24 }
 0x332   : > { %v1380_v26 = vpop.f32.mrf.mxu1 }
 0x333   : > { %v1512_v57 = vld [vmem:[#allocation1 + $0x2] ss:$9 sm:$0xff] }
 0x334   : > { %v1402_v59 = vpop.f32.mrf.mxu0  ;;  %1515 = vst [vmem:[#allocation1] sm:$0xff] %v1361_v24 }
 0x339   : > { %v1424_v28 = vpop.f32.mrf.mxu2 }
 0x33a   : > { %v1446_v29 = vpop.f32.mrf.mxu3  ;;  %v1382_v31 = vpop.f32.mrf.mxu1 }
 0x33b   : > { %v1517_v33 = vld [vmem:[#allocation1 + $0x3] ss:$9 sm:$0xff] }
 0x33c   : > { %v1404_v34 = vpop.f32.mrf.mxu0  ;;  %1518 = vrot.lane.b32.xlu1 %v1517_v33, %s1897_s16 }
 0x33d   : > { %v1405_v37 = vadd.f32 %v1404_v34, %v1382_v31 }
 0x33f   : > { %1523 = vst [vmem:[#allocation1] sm:$0xff] %v1405_v37 }
 0x341   : > { %v1426_v30 = vpop.f32.mrf.mxu2 }
 0x342   : > { %v1448_v27 = vpop.f32.mrf.mxu3 }
 0x343   : > { %v1449_v50 = vadd.f32 %v1448_v27, %v1426_v30 }
 0x346   : > { %v1525_v38 = vld [vmem:[#allocation1 + $0x4] ss:$9 sm:$0xff] }
 0x347   : > { %1528 = vst [vmem:[#allocation1] sm:$0xff] %v1405_v37 }
 0x34e   : > { %v1530_v35 = vld [vmem:[#allocation1 + $0x5] ss:$9 sm:$0xff]  ;;  %v1458_v47 = vpop.permute.xlu2 %1457 }
 0x34f   : > { %1531 = vrot.lane.b32.xlu2 %v1530_v35, %s1897_s16  ;;  %1536 = vst [vmem:[#allocation1] sm:$0xff] %v1449_v50  ;;  %v1460_v52 = vadd.f32 %v1458_v47, %v1452_v48 }
 0x351   : > { %v1466_v62 = vadd.f32 %v3079_v4, %v1460_v52 }
 0x356   : > { %v1538_v36 = vld [vmem:[#allocation1 + $0x6] ss:$9 sm:$0xff] }
 0x357   : > { %1541 = vst [vmem:[#allocation1] sm:$0xff] %v1449_v50 }
 0x35e   : > { %v1543_v39 = vld [vmem:[#allocation1 + $0x7] ss:$9 sm:$0xff] }
 0x35f   : > { %1544 = vrot.lane.b32.xlu0 %v1543_v39, %s1897_s16 }
 0x376   : > { %v1471_v56 = vpop.permute.xlu0 %1470 }
 0x377   : > { %v1473_v11 = vadd.f32 %v1471_v56, %v1466_v62 }
 0x379   : > { %v1479_v61 = vadd.f32 %v3082_v10, %v1473_v11 }
 0x37e   : > { %v1497_v2 = vpop.permute.xlu2 %1496 }
 0x386   : > { %v1484_v0 = vpop.permute.xlu1 %1483 }
 0x387   : > { %v1486_v49 = vadd.f32 %v1484_v0, %v1479_v61 }
 0x389   : > { %v1492_v1 = vadd.f32 %v1490_v19, %v1486_v49 }
 0x38b   : > { %v1499_v4 = vadd.f32 %v1497_v2, %v1492_v1 }
 0x38d   : > { %v1500_v51 = vadd.f32 %v1499_v4, %v3085_v20  ;;  %v1587_v20 = vld [vmem:[%s3184_s10] sm:$0x1] }
 0x39e   : > { %v1506_v3 = vpop.permute.xlu0 %1505 }
 0x39f   : > { %v1508_v5 = vadd.f32 %v1506_v3, %v1500_v51 }
 0x3a1   : > { %v1514_v7 = vadd.f32 %v1512_v57, %v1508_v5 }
 0x3a9   : > { %v1532_v9 = vpop.permute.xlu2 %1531 }
 0x3ae   : > { %v1519_v6 = vpop.permute.xlu1 %1518 }
 0x3af   : > { %v1521_v53 = vadd.f32 %v1519_v6, %v1514_v7 }
 0x3b1   : > { %v1527_v8 = vadd.f32 %v1525_v38, %v1521_v53 }
 0x3b3   : > { %v1534_v10 = vadd.f32 %v1532_v9, %v1527_v8 }
 0x3b5   : > { %v1540_v12 = vadd.f32 %v1538_v36, %v1534_v10 }
 0x3d1   : > { %v1545_v13 = vpop.permute.xlu0 %1544 }
 0x3d2   : > { %v1547_v60 = vadd.f32 %v1545_v13, %v1540_v12 }
 0x3d4   : > { %v1548_v14 = vmax.f32 %v1547_v60, 0.0 }
 0x3d6   : > { %1721 = vmatmul.msk.f32.vlgmr.msrb.gmra.mxu1 %vm1558_vm0, %v1548_v14 }
 0x453   : > { %v1579_v19 = vpop.f32.mrf.mxu1 }
 0x454   : > { %v1580_v54 = vadd.f32 %v1579_v19, %v1557_v18 }
 0x456   : > { %v1582_v55 = vmax.f32 %v1580_v54, 0.0 }
 0x458   : > { %1722 = vmatmul.msk.f32.vlgmr.msra.gmra.mxu1 %vm1588_vm1, %v1582_v55 }
 0x4d5   : > { %v1609_v21 = vpop.f32.mrf.mxu1 }
 0x4d6   : > { %v1610_v22 = vadd.f32 %v1609_v21, %v1587_v20 }
 0x4d8   : > { %1613 = vst.msk [vmem:[%s378_s30] sm:$0x1] %vm1612_vm2, %v1610_v22 }
 0x4d9   : > { %1850 = shalt.err (!%p1847_p3)
}
 0x4da   : > { %1726 = dma.vmem_to_hbm [thread:$0]  (%p1996_p5), %s1626_s12, 16, %s1628_s0, %s1615_s13  }
 0x4db PF: > { %p1732_p4 = scmp.ge.s32.totalorder %s1885_s20, 2  ;;  %s1639_s15 = sand.u32 1, %s1873_s17  }
 0x4dc   : > { %s1640_s29 = scalar_lea.sflag [#allocation3], %s1639_s15 }
 0x4dd   : > { %p1729_p7 = pnand %p1732_p4, %p2000_p6 }
 0x4df   : > { %p1730_p8 = pneg %p1729_p7 }
 0x4e1   : > { %1868 = dma.done.wait (%p1730_p8), %s1640_s29, 16  }
 0x4e2   : > { %1870 = vsyncadd (%p1730_p8), %s1640_s29, 4294967280  ;;  %p21_p9 = scmp.ge.s32.totalorder %s1983_s23, 4   ;;  %s3200_s17 = smov %s1877_s18 }
 0x4e3   : > { %s3201_s18 = smov %s1881_s19  ;;  %s3202_s19 = smov %s1994_s26 }
 0x4e4   : > { %s3203_s20 = smov %s1983_s23  ;;  %23 = sbr.rel (!%p21_p9) target bundleno = 6 (0x6), region = 113 }
 0x4e9   :  { %1645 = vsyncpa [#allocation3], 1 }
 0x4ea   :  { %1647 = vsyncpa [#allocation3 + $0x1], 1 }

</bundles_post_ra>
